<compile_context>
chip_gen: v7x
topology: tpu7x:2x2x1
jax: 0.10.0
libtpu: 0.0.40
codegen_flags: <defaults>
</compile_context>

<pallas_src>
import math

import jax
import jax.numpy as jnp
from jax.experimental import pallas as pl
from jax.experimental.pallas import tpu as pltpu

H1, H2 = 400, 300          # true hidden sizes (PyTorch module)
H1P, H2P = 512, 384        # zero-padded to multiples of 128


def _round_up(x, m):
    return (x + m - 1) // m * m


# ------------------------------ Pallas kernel ------------------------------ #
def critic_kernel(
    x_ref, u_ref,                  # [TB, S] / [TB, A]       bf16
    w14x_ref, w14u_ref, b14_ref,   # [S, 2*H1P], [A, 2*H1P]  bf16 ; [1, 2*H1P] f32
    w2_ref, b2_ref,                # [H1P, H2P] bf16 ; [1, H2P] f32   (Q1 branch)
    w5_ref, b5_ref,                # [H1P, H2P] bf16 ; [1, H2P] f32   (Q2 branch)
    w36_ref, b36_ref,              # [2*H2P, 2] bf16 (block-diag heads) ; [1, 2] f32
    q_ref,                         # [TB, 2] f32  (col 0 = q1, col 1 = q2)
):
    # Layer 1, both branches fused along the output (lane) axis.
    # concat([x, u]) @ W is computed as x @ Wx + u @ Wu -> no HBM concat.
    h = (
        jnp.dot(x_ref[...], w14x_ref[...], preferred_element_type=jnp.float32)
        + jnp.dot(u_ref[...], w14u_ref[...], preferred_element_type=jnp.float32)
        + b14_ref[...]
    )
    h = jnp.maximum(h, 0.0)                          # [TB, 2*H1P] f32
    h1 = h[:, :H1P].astype(jnp.bfloat16)             # Q1 hidden
    h2 = h[:, H1P:].astype(jnp.bfloat16)             # Q2 hidden

    # Layer 2 (kept as two matmuls to avoid doubling layer-2 weight bytes).
    g1 = jnp.maximum(
        jnp.dot(h1, w2_ref[...], preferred_element_type=jnp.float32) + b2_ref[...], 0.0
    )
    g2 = jnp.maximum(
        jnp.dot(h2, w5_ref[...], preferred_element_type=jnp.float32) + b5_ref[...], 0.0
    )

    # Layer 3: single block-diagonal head -> one lane-dense [TB, 2] store.
    g = jnp.concatenate([g1, g2], axis=1).astype(jnp.bfloat16)   # [TB, 2*H2P]
    q_ref[...] = (
        jnp.dot(g, w36_ref[...], preferred_element_type=jnp.float32) + b36_ref[...]
    )


# --------------------------------- Wrapper ---------------------------------- #
def critic_forward(x, u, packed, *, tb=512):
    """x: [B, state_dim], u: [B, action_dim] -> (q1 [B, 1], q2 [B, 1])."""
    B, S = x.shape
    _, A = u.shape

    TB = min(tb, _round_up(B, 8))
    B_pad = _round_up(B, TB)
    if B_pad != B:
        x = jnp.pad(x, ((0, B_pad - B), (0, 0)))
        u = jnp.pad(u, ((0, B_pad - B), (0, 0)))
    x = x.astype(jnp.bfloat16)
    u = u.astype(jnp.bfloat16)

    grid = (B_pad // TB,)

    def resident(arr):  # weights/biases: same block for every batch tile
        return pl.BlockSpec(arr.shape, lambda i: (0, 0))

    in_specs = [
        pl.BlockSpec((TB, S), lambda i: (i, 0)),
        pl.BlockSpec((TB, A), lambda i: (i, 0)),
        resident(packed["w14x"]),
        resident(packed["w14u"]),
        resident(packed["b14"]),
        resident(packed["w2"]),
        resident(packed["b2"]),
        resident(packed["w5"]),
        resident(packed["b5"]),
        resident(packed["w36"]),
        resident(packed["b36"]),
    ]
    out_specs = pl.BlockSpec((TB, 2), lambda i: (i, 0))

    # Advisory cost estimate (true math, not padded) so XLA overlaps the call.
    in_dim = S + A
    flops = 2 * B_pad * 2 * (in_dim * H1 + H1 * H2 + H2 * 1)
    weight_bytes = 2 * (in_dim * 2 * H1P + 2 * H1P * H2P + 2 * H2P * 2) + 4 * (
        2 * H1P + 2 * H2P + 2
    )
    act_bytes = 2 * B_pad * in_dim + 4 * B_pad * 2
    cost = pl.CostEstimate(
        flops=flops, transcendentals=0, bytes_accessed=weight_bytes + act_bytes
    )

    q = pl.pallas_call(
        critic_kernel,
        out_shape=jax.ShapeDtypeStruct((B_pad, 2), jnp.float32),
        grid=grid,
        in_specs=in_specs,
        out_specs=out_specs,
        compiler_params=pltpu.CompilerParams(dimension_semantics=("parallel",)),
        cost_estimate=cost,
    )(
        x, u,
        packed["w14x"], packed["w14u"], packed["b14"],
        packed["w2"], packed["b2"],
        packed["w5"], packed["b5"],
        packed["w36"], packed["b36"],
    )
    q = q[:B]
    return q[:, 0:1], q[:, 1:2]


# ---------------------- Deterministic parameter init ----------------------- #
def init_linear(key, fan_in, fan_out):
    """PyTorch nn.Linear default init: U(-1/sqrt(fan_in), 1/sqrt(fan_in))."""
    kw, kb = jax.random.split(key)
    bound = 1.0 / math.sqrt(fan_in)
    w = jax.random.uniform(kw, (fan_in, fan_out), jnp.float32, -bound, bound)
    b = jax.random.uniform(kb, (fan_out,), jnp.float32, -bound, bound)
    return w, b


def init_critic_params(key, state_dim, action_dim):
    keys = jax.random.split(key, 6)
    in_dim = state_dim + action_dim
    w1, b1 = init_linear(keys[0], in_dim, H1)
    w2, b2 = init_linear(keys[1], H1, H2)
    w3, b3 = init_linear(keys[2], H2, 1)
    w4, b4 = init_linear(keys[3], in_dim, H1)
    w5, b5 = init_linear(keys[4], H1, H2)
    w6, b6 = init_linear(keys[5], H2, 1)
    return dict(w1=w1, b1=b1, w2=w2, b2=b2, w3=w3, b3=b3,
                w4=w4, b4=b4, w5=w5, b5=b5, w6=w6, b6=b6)


def pack_params(raw, state_dim):
    """Zero-pad hidden dims, fuse twin branches, cast MXU weights to bf16."""
    pad_cols = lambda w, c: jnp.pad(w, ((0, 0), (0, c - w.shape[1])))
    pad_rows = lambda w, r: jnp.pad(w, ((0, r - w.shape[0]), (0, 0)))

    # Layer 1: [in, 1024] = [w1_pad | w4_pad], split at the state/action row.
    w14 = jnp.concatenate([pad_cols(raw["w1"], H1P), pad_cols(raw["w4"], H1P)], axis=1)
    w14x = w14[:state_dim].astype(jnp.bfloat16)
    w14u = w14[state_dim:].astype(jnp.bfloat16)
    b14 = jnp.concatenate(
        [jnp.pad(raw["b1"], (0, H1P - H1)), jnp.pad(raw["b4"], (0, H1P - H1))]
    )[None, :].astype(jnp.float32)

    # Layer 2: padded per-branch weights.
    w2p = pad_rows(pad_cols(raw["w2"], H2P), H1P).astype(jnp.bfloat16)
    w5p = pad_rows(pad_cols(raw["w5"], H2P), H1P).astype(jnp.bfloat16)
    b2p = jnp.pad(raw["b2"], (0, H2P - H2))[None, :].astype(jnp.float32)
    b5p = jnp.pad(raw["b5"], (0, H2P - H2))[None, :].astype(jnp.float32)

    # Layer 3: block-diagonal head -> single [768, 2] weight.
    w3p = pad_rows(raw["w3"], H2P)                       # [384, 1]
    w6p = pad_rows(raw["w6"], H2P)
    z = jnp.zeros_like(w3p)
    w36 = jnp.concatenate(
        [jnp.concatenate([w3p, z], axis=1), jnp.concatenate([z, w6p], axis=1)], axis=0
    ).astype(jnp.bfloat16)                               # [768, 2]
    b36 = jnp.stack([raw["b3"][0], raw["b6"][0]])[None, :].astype(jnp.float32)

    return dict(w14x=w14x, w14u=w14u, b14=b14, w2=w2p, b2=b2p,
                w5=w5p, b5=b5p, w36=w36, b36=b36)


# --------------------------------- Reference -------------------------------- #
def critic_ref(x, u, p):
    xu = jnp.concatenate([x, u], axis=1)
    h = jnp.maximum(xu @ p["w1"] + p["b1"], 0.0)
    h = jnp.maximum(h @ p["w2"] + p["b2"], 0.0)
    q1 = h @ p["w3"] + p["b3"]
    g = jnp.maximum(xu @ p["w4"] + p["b4"], 0.0)
    g = jnp.maximum(g @ p["w5"] + p["b5"], 0.0)
    q2 = g @ p["w6"] + p["b6"]
    return q1, q2


if __name__ == "__main__":
    state_dim, action_dim, batch = 12, 4, 8

    key = jax.random.PRNGKey(0)
    kx, ku, kp = jax.random.split(key, 3)
    x = jax.random.normal(kx, (batch, state_dim), jnp.float32)
    u = jax.random.normal(ku, (batch, action_dim), jnp.float32)

    raw = init_critic_params(kp, state_dim, action_dim)
    packed = pack_params(raw, state_dim)

    q1, q2 = critic_forward(x, u, packed)
    jax.block_until_ready((q1, q2))

    r1, r2 = critic_ref(x, u, raw)
    assert q1.shape == (batch, 1) and q2.shape == (batch, 1)
    # bf16 MXU inputs -> ~1e-2-level divergence from the f32 reference.
    assert jnp.allclose(q1, r1, atol=5e-2, rtol=5e-2)
    assert jnp.allclose(q2, r2, atol=5e-2, rtol=5e-2)

    print("KERNEL_OK")
</pallas_src>

<mosaic_0001>
module attributes {stable_mosaic.version = 11 : i64} {
  func.func @critic_kernel(%arg0: i32, %arg1: memref<8x12xbf16, #tpu.memory_space<vmem>>, %arg2: memref<8x4xbf16, #tpu.memory_space<vmem>>, %arg3: memref<12x1024xbf16, #tpu.memory_space<vmem>>, %arg4: memref<4x1024xbf16, #tpu.memory_space<vmem>>, %arg5: memref<1x1024xf32, #tpu.memory_space<vmem>>, %arg6: memref<512x384xbf16, #tpu.memory_space<vmem>>, %arg7: memref<1x384xf32, #tpu.memory_space<vmem>>, %arg8: memref<512x384xbf16, #tpu.memory_space<vmem>>, %arg9: memref<1x384xf32, #tpu.memory_space<vmem>>, %arg10: memref<768x2xbf16, #tpu.memory_space<vmem>>, %arg11: memref<1x2xf32, #tpu.memory_space<vmem>>, %arg12: memref<8x2xf32, #tpu.memory_space<vmem>>) attributes {dimension_semantics = [#tpu.dimension_semantics<parallel>], iteration_bounds = array<i64: 1>, scalar_prefetch = 0 : i64, scratch_operands = 0 : i64, tpu.core_type = #tpu.core_type<tc>, window_params = [{transform_indices = @transform_0, window_bounds = array<i64: 8, 12>}, {transform_indices = @transform_1, window_bounds = array<i64: 8, 4>}, {pipeline_mode = #tpu.pipeline_mode<synchronous>, transform_indices = @transform_2, window_bounds = array<i64: 12, 1024>}, {pipeline_mode = #tpu.pipeline_mode<synchronous>, transform_indices = @transform_3, window_bounds = array<i64: 4, 1024>}, {pipeline_mode = #tpu.pipeline_mode<synchronous>, transform_indices = @transform_4, window_bounds = array<i64: 1, 1024>}, {pipeline_mode = #tpu.pipeline_mode<synchronous>, transform_indices = @transform_5, window_bounds = array<i64: 512, 384>}, {pipeline_mode = #tpu.pipeline_mode<synchronous>, transform_indices = @transform_6, window_bounds = array<i64: 1, 384>}, {pipeline_mode = #tpu.pipeline_mode<synchronous>, transform_indices = @transform_7, window_bounds = array<i64: 512, 384>}, {pipeline_mode = #tpu.pipeline_mode<synchronous>, transform_indices = @transform_8, window_bounds = array<i64: 1, 384>}, {pipeline_mode = #tpu.pipeline_mode<synchronous>, transform_indices = @transform_9, window_bounds = array<i64: 768, 2>}, {pipeline_mode = #tpu.pipeline_mode<synchronous>, transform_indices = @transform_10, window_bounds = array<i64: 1, 2>}, {transform_indices = @transform_11, window_bounds = array<i64: 8, 2>}]} {
    %c0 = arith.constant 0 : index
    %c0_0 = arith.constant 0 : index
    %0 = vector.load %arg1[%c0, %c0_0] : memref<8x12xbf16, #tpu.memory_space<vmem>>, vector<8x12xbf16>
    %c0_1 = arith.constant 0 : index
    %c0_2 = arith.constant 0 : index
    %1 = vector.load %arg3[%c0_1, %c0_2] : memref<12x1024xbf16, #tpu.memory_space<vmem>>, vector<12x1024xbf16>
    %cst = arith.constant dense<0.000000e+00> : vector<8x1024xf32>
    %2 = tpu.matmul %0, %1, %cst {dimension_numbers = #tpu.dot_dimension_numbers<[1], [0], [0], [1], [0, 0, 1, 1], [], []>} : vector<8x12xbf16>, vector<12x1024xbf16>, vector<8x1024xf32> -> vector<8x1024xf32>
    %c0_3 = arith.constant 0 : index
    %c0_4 = arith.constant 0 : index
    %3 = vector.load %arg2[%c0_3, %c0_4] : memref<8x4xbf16, #tpu.memory_space<vmem>>, vector<8x4xbf16>
    %c0_5 = arith.constant 0 : index
    %c0_6 = arith.constant 0 : index
    %4 = vector.load %arg4[%c0_5, %c0_6] : memref<4x1024xbf16, #tpu.memory_space<vmem>>, vector<4x1024xbf16>
    %cst_7 = arith.constant dense<0.000000e+00> : vector<8x1024xf32>
    %5 = tpu.matmul %3, %4, %cst_7 {dimension_numbers = #tpu.dot_dimension_numbers<[1], [0], [0], [1], [0, 0, 1, 1], [], []>} : vector<8x4xbf16>, vector<4x1024xbf16>, vector<8x1024xf32> -> vector<8x1024xf32>
    %6 = arith.addf %2, %5 : vector<8x1024xf32>
    %c0_8 = arith.constant 0 : index
    %c0_9 = arith.constant 0 : index
    %7 = vector.load %arg5[%c0_8, %c0_9] : memref<1x1024xf32, #tpu.memory_space<vmem>>, vector<1x1024xf32>
    %8 = vector.broadcast %7 : vector<1x1024xf32> to vector<8x1024xf32>
    %9 = arith.addf %6, %8 : vector<8x1024xf32>
    %cst_10 = arith.constant 0.000000e+00 : f32
    %10 = vector.broadcast %cst_10 : f32 to vector<8x1024xf32>
    %11 = arith.maximumf %9, %10 : vector<8x1024xf32>
    %12 = vector.extract_strided_slice %11 {offsets = [0, 0], sizes = [8, 512], strides = [1, 1]} : vector<8x1024xf32> to vector<8x512xf32>
    %13 = arith.truncf %12 : vector<8x512xf32> to vector<8x512xbf16>
    %14 = vector.extract_strided_slice %11 {offsets = [0, 512], sizes = [8, 512], strides = [1, 1]} : vector<8x1024xf32> to vector<8x512xf32>
    %15 = arith.truncf %14 : vector<8x512xf32> to vector<8x512xbf16>
    %c0_11 = arith.constant 0 : index
    %c0_12 = arith.constant 0 : index
    %16 = vector.load %arg6[%c0_11, %c0_12] : memref<512x384xbf16, #tpu.memory_space<vmem>>, vector<512x384xbf16>
    %cst_13 = arith.constant dense<0.000000e+00> : vector<8x384xf32>
    %17 = tpu.matmul %13, %16, %cst_13 {dimension_numbers = #tpu.dot_dimension_numbers<[1], [0], [0], [1], [0, 0, 1, 1], [], []>} : vector<8x512xbf16>, vector<512x384xbf16>, vector<8x384xf32> -> vector<8x384xf32>
    %c0_14 = arith.constant 0 : index
    %c0_15 = arith.constant 0 : index
    %18 = vector.load %arg7[%c0_14, %c0_15] : memref<1x384xf32, #tpu.memory_space<vmem>>, vector<1x384xf32>
    %19 = vector.broadcast %18 : vector<1x384xf32> to vector<8x384xf32>
    %20 = arith.addf %17, %19 : vector<8x384xf32>
    %cst_16 = arith.constant 0.000000e+00 : f32
    %21 = vector.broadcast %cst_16 : f32 to vector<8x384xf32>
    %22 = arith.maximumf %20, %21 : vector<8x384xf32>
    %c0_17 = arith.constant 0 : index
    %c0_18 = arith.constant 0 : index
    %23 = vector.load %arg8[%c0_17, %c0_18] : memref<512x384xbf16, #tpu.memory_space<vmem>>, vector<512x384xbf16>
    %cst_19 = arith.constant dense<0.000000e+00> : vector<8x384xf32>
    %24 = tpu.matmul %15, %23, %cst_19 {dimension_numbers = #tpu.dot_dimension_numbers<[1], [0], [0], [1], [0, 0, 1, 1], [], []>} : vector<8x512xbf16>, vector<512x384xbf16>, vector<8x384xf32> -> vector<8x384xf32>
    %c0_20 = arith.constant 0 : index
    %c0_21 = arith.constant 0 : index
    %25 = vector.load %arg9[%c0_20, %c0_21] : memref<1x384xf32, #tpu.memory_space<vmem>>, vector<1x384xf32>
    %26 = vector.broadcast %25 : vector<1x384xf32> to vector<8x384xf32>
    %27 = arith.addf %24, %26 : vector<8x384xf32>
    %cst_22 = arith.constant 0.000000e+00 : f32
    %28 = vector.broadcast %cst_22 : f32 to vector<8x384xf32>
    %29 = arith.maximumf %27, %28 : vector<8x384xf32>
    %30 = tpu.concatenate %22, %29 in 1 : vector<8x384xf32>, vector<8x384xf32> -> vector<8x768xf32>
    %31 = arith.truncf %30 : vector<8x768xf32> to vector<8x768xbf16>
    %c0_23 = arith.constant 0 : index
    %c0_24 = arith.constant 0 : index
    %32 = vector.load %arg10[%c0_23, %c0_24] : memref<768x2xbf16, #tpu.memory_space<vmem>>, vector<768x2xbf16>
    %cst_25 = arith.constant dense<0.000000e+00> : vector<8x2xf32>
    %33 = tpu.matmul %31, %32, %cst_25 {dimension_numbers = #tpu.dot_dimension_numbers<[1], [0], [0], [1], [0, 0, 1, 1], [], []>} : vector<8x768xbf16>, vector<768x2xbf16>, vector<8x2xf32> -> vector<8x2xf32>
    %c0_26 = arith.constant 0 : index
    %c0_27 = arith.constant 0 : index
    %34 = vector.load %arg11[%c0_26, %c0_27] : memref<1x2xf32, #tpu.memory_space<vmem>>, vector<1x2xf32>
    %35 = vector.broadcast %34 : vector<1x2xf32> to vector<8x2xf32>
    %36 = arith.addf %33, %35 : vector<8x2xf32>
    %c0_28 = arith.constant 0 : index
    %c0_29 = arith.constant 0 : index
    %37 = vector.load %arg12[%c0_28, %c0_29] : memref<8x2xf32, #tpu.memory_space<vmem>>, vector<8x2xf32>
    tpu.vector_store %arg12[%c0_28, %c0_29], %36 {strides = array<i32>} : memref<8x2xf32, #tpu.memory_space<vmem>>, vector<8x2xf32>,
    return
  }
  func.func @transform_0(%arg0: i32) -> (i32, i32) {
    %c0_i32 = arith.constant 0 : i32
    %c0_i32_0 = arith.constant 0 : i32
    return %arg0, %c0_i32 : i32, i32
  }
  func.func @transform_1(%arg0: i32) -> (i32, i32) {
    %c0_i32 = arith.constant 0 : i32
    %c0_i32_0 = arith.constant 0 : i32
    return %arg0, %c0_i32 : i32, i32
  }
  func.func @transform_2(%arg0: i32) -> (i32, i32) {
    %c0_i32 = arith.constant 0 : i32
    %c0_i32_0 = arith.constant 0 : i32
    %c0_i32_1 = arith.constant 0 : i32
    return %c0_i32, %c0_i32_0 : i32, i32
  }
  func.func @transform_3(%arg0: i32) -> (i32, i32) {
    %c0_i32 = arith.constant 0 : i32
    %c0_i32_0 = arith.constant 0 : i32
    %c0_i32_1 = arith.constant 0 : i32
    return %c0_i32, %c0_i32_0 : i32, i32
  }
  func.func @transform_4(%arg0: i32) -> (i32, i32) {
    %c0_i32 = arith.constant 0 : i32
    %c0_i32_0 = arith.constant 0 : i32
    %c0_i32_1 = arith.constant 0 : i32
    return %c0_i32, %c0_i32_0 : i32, i32
  }
  func.func @transform_5(%arg0: i32) -> (i32, i32) {
    %c0_i32 = arith.constant 0 : i32
    %c0_i32_0 = arith.constant 0 : i32
    %c0_i32_1 = arith.constant 0 : i32
    return %c0_i32, %c0_i32_0 : i32, i32
  }
  func.func @transform_6(%arg0: i32) -> (i32, i32) {
    %c0_i32 = arith.constant 0 : i32
    %c0_i32_0 = arith.constant 0 : i32
    %c0_i32_1 = arith.constant 0 : i32
    return %c0_i32, %c0_i32_0 : i32, i32
  }
  func.func @transform_7(%arg0: i32) -> (i32, i32) {
    %c0_i32 = arith.constant 0 : i32
    %c0_i32_0 = arith.constant 0 : i32
    %c0_i32_1 = arith.constant 0 : i32
    return %c0_i32, %c0_i32_0 : i32, i32
  }
  func.func @transform_8(%arg0: i32) -> (i32, i32) {
    %c0_i32 = arith.constant 0 : i32
    %c0_i32_0 = arith.constant 0 : i32
    %c0_i32_1 = arith.constant 0 : i32
    return %c0_i32, %c0_i32_0 : i32, i32
  }
  func.func @transform_9(%arg0: i32) -> (i32, i32) {
    %c0_i32 = arith.constant 0 : i32
    %c0_i32_0 = arith.constant 0 : i32
    %c0_i32_1 = arith.constant 0 : i32
    return %c0_i32, %c0_i32_0 : i32, i32
  }
  func.func @transform_10(%arg0: i32) -> (i32, i32) {
    %c0_i32 = arith.constant 0 : i32
    %c0_i32_0 = arith.constant 0 : i32
    %c0_i32_1 = arith.constant 0 : i32
    return %c0_i32, %c0_i32_0 : i32, i32
  }
  func.func @transform_11(%arg0: i32) -> (i32, i32) {
    %c0_i32 = arith.constant 0 : i32
    %c0_i32_0 = arith.constant 0 : i32
    return %arg0, %c0_i32 : i32, i32
  }
}

</mosaic_0001>

<bundles_post_ra>
// kernel: tpu_custom_call.1
= control target key start
LH: loop header
LB: loop body
LE: loop exit
PB: predicated region body
PF: predicated region fallthrough
CT: control target
= control target key end

     0   :  { %16 = vsyncpa [#allocation3], 0  ;;  %s3950_s0 = inlined_call_operand.vmem [shape: bf16[8,12], index: 0, kind: input, shape index: {}]   ;;  %s3951_s1 = inlined_call_operand.vmem [shape: bf16[8,4], index: 1, kind: input, shape index: {}]   ;;  %s3952_s2 = inlined_call_operand.vmem [shape: bf16[12,1024], index: 2, kind: input, shape index: {}]   ;;  %s3953_s3 = inlined_call_operand.vmem [shape: bf16[4,1024], index: 3, kind: input, shape index: {}]   ;;  %s3954_s4 = inlined_call_operand.vmem [shape: f32[1,1024], index: 4, kind: input, shape index: {}]   ;;  %s3955_s5 = inlined_call_operand.hbm [shape: bf16[512,384], index: 5, kind: input, shape index: {}]   ;;  %s3956_s6 = inlined_call_operand.vmem [shape: f32[1,384], index: 6, kind: input, shape index: {}]   ;;  %s3957_s7 = inlined_call_operand.hbm [shape: bf16[512,384], index: 7, kind: input, shape index: {}]   ;;  %s3958_s8 = inlined_call_operand.vmem [shape: f32[1,384], index: 8, kind: input, shape index: {}]   ;;  %s3959_s9 = inlined_call_operand.vmem [shape: bf16[768,2], index: 9, kind: input, shape index: {}]   ;;  %s3960_s10 = inlined_call_operand.vmem [shape: f32[1,2], index: 10, kind: input, shape index: {}]   ;;  %s3961_s11 = inlined_call_operand.vmem [shape: f32[8,2], index: 11, kind: output, shape index: {}]  }
   0x1   :  { %17 = vsyncpa [#allocation5], 0  ;;  %s3559_s17 = smov [#allocation2]   ;;  %s3511_s21 = scalar_lea.hbm %s3955_s5, 12288 }
   0x2   :  { %s33_s18 = sshll.u32 %s3559_s17, 4  ;;  %p3512_p0 = scmp.ne.s32.totalorder %s3955_s5, %s3511_s21  ;;  %s34_s18 = int_to_ptr.vmem [resolvable:$true] %s33_s18 }
   0x3   :  { %p3515_p1 = scmp.lt.u32.totalorder %s3511_s21, %s3955_s5 }
   0x5   :  { %p3517_p2 = pnand %p3515_p1, %p3512_p0 }
   0x7   :  { %3520 = shalt.err (!%p3517_p2)
}
   0x8   :  { %s3521_s26 = scalar_lea.vmem %s34_s18, 12288  ;;  %p3526_p4 = scmp.lt.s32.totalorder %s34_s18, %s34_s18 }
   0x9   :  { %p3522_p3 = scmp.ne.s32.totalorder %s34_s18, %s3521_s26  ;;  %p3527_p5 = scmp.lt.s32.totalorder %s3521_s26, %s3521_s26 }
   0xb   :  { %p3528_p6 = por %p3527_p5, %p3526_p4 }
   0xd   :  { %p3529_p7 = pnand %p3528_p6, %p3522_p3 }
   0xf   :  { %3532 = shalt.err (!%p3529_p7)
}
  0x10   :  { %s3560_s27 = smov 192   ;;  %s3561_s28 = smov 12  }
  0x11   :  { %39 = dma.hbm_to_vmem [thread:$0]  %s3955_s5, 12288, %s34_s18, [#allocation3], %s3560_s27, %s3560_s27, %s3561_s28  }
  0x12   :  { %s3562_s12 = smov [#allocation4]   ;;  %s3533_s16 = scalar_lea.hbm %s3957_s7, 12288 }
  0x13   :  { %s47_s13 = sshll.u32 %s3562_s12, 4  ;;  %p3534_p8 = scmp.ne.s32.totalorder %s3957_s7, %s3533_s16  ;;  %s48_s13 = int_to_ptr.vmem [resolvable:$true] %s47_s13 }
  0x14   :  { %p3537_p9 = scmp.lt.u32.totalorder %s3533_s16, %s3957_s7 }
  0x16   :  { %p3539_p10 = pnand %p3537_p9, %p3534_p8 }
  0x18   :  { %3542 = shalt.err (!%p3539_p10)
}
  0x19   :  { %s3543_s22 = scalar_lea.vmem %s48_s13, 12288  ;;  %p3548_p12 = scmp.lt.s32.totalorder %s48_s13, %s48_s13 }
  0x1a   :  { %p3544_p11 = scmp.ne.s32.totalorder %s48_s13, %s3543_s22  ;;  %p3549_p13 = scmp.lt.s32.totalorder %s3543_s22, %s3543_s22 }
  0x1c   :  { %p3550_p0 = por %p3549_p13, %p3548_p12 }
  0x1e   :  { %p3551_p1 = pnand %p3550_p0, %p3544_p11 }
  0x20   :  { %3554 = shalt.err (!%p3551_p1)
}
  0x21   :  { %53 = dma.hbm_to_vmem [thread:$0]  %s3957_s7, 12288, %s48_s13, [#allocation5], %s3560_s27, %s3560_s27, %s3561_s28  }
  0x22   :  { %3555 = dma.done.wait [#allocation3], 12288  }
  0x23   :  { %3556 = vsyncadd [#allocation3], 4294955008 }
  0x24   :  { %3557 = dma.done.wait [#allocation5], 12288  }
  0x25   :  { %3558 = vsyncadd [#allocation5], 4294955008  ;;  %v85_v0 = vlaneseq  ;;  %v3563_v1 = vmov 1983009808   ;;  %v3564_v4 = vmov 0   ;;  %v68_v7 = vld [vmem:[%s3952_s2] sm:$0xff] }
  0x26   :  { %v83_v2 = vunpack.c.l.s4 %v3563_v1  ;;  %401 = vmatprep.mubr.bf16.mxu0 %v3564_v4  ;;  %176 = vmatprep.mubr.bf16.mxu1 %v3564_v4  ;;  %v72_v8 = vld [vmem:[%s3952_s2 + $0x20] sm:$0x33]  ;;  %vm344_vm0 = vcmask 1045504   ;;  %vm119_vm1 = vcmask 1041408   ;;  %v78_v14 = vld [vmem:[%s3953_s3 + $0x8] sm:$0xff]  ;;  %v70_v16 = vld [vmem:[%s3952_s2 + $0x10] sm:$0xff] }
  0x27   :  { %v3649_v3 = vshrl.u32 %v85_v0, 7  ;;  %v77_v9 = vld [vmem:[%s3953_s3] sm:$0xff]  ;;  %v2777_v10 = vcombine.high %v68_v7, %v72_v8  ;;  %v2776_v11 = vcombine.low %v68_v7, %v72_v8  ;;  %v74_v17 = vld [vmem:[%s3952_s2 + $0x30] sm:$0x33]  ;;  %vm340_vm2 = vcmask 97280   ;;  %v69_v39 = vld [vmem:[%s3952_s2 + $0x8] sm:$0xff] }
  0x28   :  { %v84_v5 = vunpack.c.0.s8 %v83_v2  ;;  %v81_v12 = vcombine.high %v77_v9, %v77_v9  ;;  %v3678_v22 = vld [vmem:[%s3950_s0] sm:$0xf]  ;;  %v2781_v23 = vcombine.high %v70_v16, %v74_v17  ;;  %v2780_v24 = vcombine.low %v70_v16, %v74_v17  ;;  %v3209_v26 = vld [vmem:[#allocation2 + $0x4] ss:$12 sps:$4 sm:$0xff]   ;;  %v3212_v34 = vld [vmem:[#allocation2 + $0x1c] ss:$12 sps:$4 sm:$0xff]  }
  0x29   :  { %2784 = vmatprep.subr.msk.bf16.mxu0 %vm344_vm0, %v2777_v10  ;;  %v346_v18 = vsel %vm344_vm0, %v2776_v11, 0  ;;  %v76_v27 = vld [vmem:[%s3951_s1] sm:$0xf]  ;;  %vm115_vm3 = vcmask 31744   ;;  %v98_v31 = vcombine.high %v78_v14, %v78_v14  ;;  %v3210_v37 = vld [vmem:[#allocation2 + $0x18] ss:$12 sps:$4 sm:$0xff]  }
  0x2a   :  { %v87_v6 = vsub.s32 %v84_v5, %v3649_v3  ;;  %370 = vmatpush1.bf16.msra.mxu0 %v346_v18  ;;  %v358_v28 = vsel %vm344_vm0, %v2780_v24, 0  ;;  %v3207_v33 = vld [vmem:[#allocation2] ss:$12 sps:$4 sm:$0xff]   ;;  %v3213_v41 = vld [vmem:[#allocation2 + $0x30] ss:$12 sps:$4 sm:$0xff]   ;;  %vm2760_vm4 = vcmask 15360  }
  0x2b   :  { %2788 = vmatprep.subr.msk.bf16.mxu0 %vm344_vm0, %v2781_v23  ;;  %v3215_v38 = vld [vmem:[#allocation2 + $0x34] ss:$12 sps:$4 sm:$0xff]   ;;  %v73_v40 = vld [vmem:[%s3952_s2 + $0x28] sm:$0x33]  ;;  %v3221_v46 = vld [vmem:[#allocation2 + $0x64] ss:$12 sps:$4 sm:$0xff]  }
  0x2c   :  { %v88_v13 = vrot.slane %v77_v9, %v87_v6  ;;  %v105_v15 = vrot.slane %v78_v14, %v87_v6  ;;  %v95_v19 = vrot.slane %v81_v12, %v87_v6  ;;  %v112_v32 = vrot.slane %v98_v31, %v87_v6  ;;  %v3218_v42 = vld [vmem:[#allocation2 + $0x4c] ss:$12 sps:$4 sm:$0xff]   ;;  %v3216_v45 = vld [vmem:[#allocation2 + $0x48] ss:$12 sps:$4 sm:$0xff]   ;;  %v3225_v56 = vld [vmem:[#allocation2 + $0x90] ss:$12 sps:$4 sm:$0xff]  }
  0x2d   :  { %2785 = vmatmul.mubr.msk.bf16.vlgmr.msra.gmra.mrb[0].mxu0 %vm340_vm2, %v3678_v22  ;;  %v2779_v44 = vcombine.high %v69_v39, %v73_v40  ;;  %v71_v47 = vld [vmem:[%s3952_s2 + $0x18] sm:$0xff]  ;;  %v2778_v48 = vcombine.low %v69_v39, %v73_v40  ;;  %v3219_v50 = vld [vmem:[#allocation2 + $0x60] ss:$12 sps:$4 sm:$0xff]   ;;  %v3234_v59 = vld [vmem:[#allocation2 + $0xc8] ss:$12 sps:$4 sm:$0xff]  }
  0x2e   :  { %v96_v20 = vcombine.high %v88_v13, %v88_v13  ;;  %v121_v21 = vsel %vm119_vm1, %v88_v13, 0  ;;  %v97_v25 = vcombine.high %v95_v19, %v95_v19  ;;  %v127_v29 = vsel %vm119_vm1, %v95_v19, 0  ;;  %452 = vmatpush1.bf16.msra.mxu0 %v358_v28  ;;  %483 = vmatprep.mubr.bf16.mxu0 %v3564_v4  ;;  %v75_v49 = vld [vmem:[%s3952_s2 + $0x38] sm:$0x33]  ;;  %v3227_v55 = vld [vmem:[#allocation2 + $0x94] ss:$12 sps:$4 sm:$0xff]  }
  0x2f   :  { %v113_v30 = vcombine.high %v105_v15, %v105_v15  ;;  %1256 = vmatprep.subr.bf16.mxu0 %v3209_v26  ;;  %v133_v35 = vsel %vm119_vm1, %v105_v15, 0  ;;  %v114_v36 = vcombine.high %v112_v32, %v112_v32  ;;  %v139_v43 = vsel %vm119_vm1, %v112_v32, 0  ;;  %v3224_v51 = vld [vmem:[#allocation2 + $0x7c] ss:$12 sps:$4 sm:$0xff]   ;;  %v3222_v52 = vld [vmem:[#allocation2 + $0x78] ss:$12 sps:$4 sm:$0xff]  }
  0x30   :  { %2768 = vmatprep.subr.msk.bf16.mxu1 %vm119_vm1, %v96_v20  ;;  %v352_v53 = vsel %vm344_vm0, %v2778_v48, 0  ;;  %v2783_v54 = vcombine.high %v71_v47, %v75_v49  ;;  %v2782_v57 = vcombine.low %v71_v47, %v75_v49  ;;  %v3230_v58 = vld [vmem:[#allocation2 + $0xac] ss:$12 sps:$4 sm:$0xff]   ;;  %v3228_v60 = vld [vmem:[#allocation2 + $0xa8] ss:$12 sps:$4 sm:$0xff]   ;;  %v3727_v32 = vsub.s32 0, %v3649_v3 }
  0x31   :  { %145 = vmatpush1.bf16.msra.mxu1 %v121_v21  ;;  %v3233_v62 = vld [vmem:[#allocation2 + $0xc4] ss:$12 sps:$4 sm:$0xff]   ;;  %v3231_v63 = vld [vmem:[#allocation2 + $0xc0] ss:$12 sps:$4 sm:$0xff]   ;;  %v3238_v0 = vld [vmem:[#allocation2 + $0xdc] ss:$12 sps:$4 sm:$0xff]  }
  0x32   :  { %2770 = vmatprep.subr.msk.bf16.mxu1 %vm119_vm1, %v97_v25  ;;  %v364_v61 = vsel %vm344_vm0, %v2782_v57, 0  ;;  %v3235_v1 = vld [vmem:[#allocation2 + $0x8] ss:$12 sps:$4 sm:$0xff]   ;;  %v3239_v2 = vld [vmem:[#allocation2 + $0xe0] ss:$12 sps:$4 sm:$0xff]  }
  0x33   :  { %v3236_v5 = vld [vmem:[#allocation2 + $0xd8] ss:$12 sps:$4 sm:$0xff]   ;;  %v3243_v6 = vld [vmem:[#allocation2 + $0xf4] ss:$12 sps:$4 sm:$0xff]   ;;  %v3241_v9 = vld [vmem:[#allocation2 + $0xf0] ss:$12 sps:$4 sm:$0xff]  }
  0x34   :  { %2769 = vmatmul.mubr.msk.bf16.vlgmr.msra.gmra.mrb[0].mxu1 %vm115_vm3, %v76_v27  ;;  %v3240_v7 = vld [vmem:[#allocation2 + $0x20] ss:$12 sps:$4 sm:$0xff]   ;;  %v3244_v8 = vld [vmem:[#allocation2 + $0xf8] ss:$12 sps:$4 sm:$0xff]   ;;  %v3249_v11 = vld [vmem:[#allocation2 + $0x110] ss:$12 sps:$4 sm:$0xff]  }
  0x35   :  { %186 = vmatpush1.bf16.msra.mxu1 %v127_v29  ;;  %217 = vmatprep.mubr.bf16.mxu1 %v3564_v4  ;;  %v3245_v10 = vld [vmem:[#allocation2 + $0x38] ss:$12 sps:$4 sm:$0xff]   ;;  %v3246_v12 = vld [vmem:[#allocation2 + $0x108] ss:$12 sps:$4 sm:$0xff]   ;;  %v3250_v14 = vld [vmem:[#allocation2 + $0x50] ss:$12 sps:$4 sm:$0xff]  }
  0x36   :  { %2772 = vmatprep.subr.msk.bf16.mxu1 %vm119_vm1, %v113_v30  ;;  %2789 = vmatmul.mubr.msk.bf16.vlgmr.msra.gmra.mrb[4].mxu0 %vm340_vm2, %v3678_v22  ;;  %v3253_v13 = vld [vmem:[#allocation2 + $0x124] ss:$12 sps:$4 sm:$0xff]   ;;  %v3254_v15 = vld [vmem:[#allocation2 + $0x128] ss:$12 sps:$4 sm:$0xff]   ;;  %v3251_v16 = vld [vmem:[#allocation2 + $0x120] ss:$12 sps:$4 sm:$0xff]  }
  0x37   :  { %1257 = vmatpush1.bf16.msra.mxu0 %v3207_v33  ;;  %v3255_v17 = vld [vmem:[#allocation2 + $0x68] ss:$12 sps:$4 sm:$0xff]   ;;  %v3259_v19 = vld [vmem:[#allocation2 + $0x140] ss:$12 sps:$4 sm:$0xff]   ;;  %v3256_v20 = vld [vmem:[#allocation2 + $0x138] ss:$12 sps:$4 sm:$0xff]  }
  0x38   :  { %1258 = vmatprep.subr.bf16.mxu0 %v3212_v34  ;;  %v3258_v18 = vld [vmem:[#allocation2 + $0x13c] ss:$12 sps:$4 sm:$0xff]   ;;  %v3260_v21 = vld [vmem:[#allocation2 + $0x80] ss:$12 sps:$4 sm:$0xff]   ;;  %v3264_v23 = vld [vmem:[#allocation2 + $0x158] ss:$12 sps:$4 sm:$0xff]  }
  0x39   :  { %v3261_v24 = vld [vmem:[#allocation2 + $0x150] ss:$12 sps:$4 sm:$0xff]   ;;  %v3265_v25 = vld [vmem:[#allocation2 + $0x98] ss:$12 sps:$4 sm:$0xff]   ;;  %v3266_v28 = vld [vmem:[#allocation2 + $0x168] ss:$12 sps:$4 sm:$0xff]  }
  0x3a   :  { %v3268_v26 = vld [vmem:[#allocation2 + $0x16c] ss:$12 sps:$4 sm:$0xff]   ;;  %v3270_v29 = vld [vmem:[#allocation2 + $0xb0] ss:$12 sps:$4 sm:$0xff]   ;;  %v3274_v31 = vld [vmem:[#allocation2 + $0x248] ss:$12 sps:$4 sm:$0xff]  }
  0x3b   :  { %1259 = vmatpush1.bf16.msra.mxu0 %v3210_v37  ;;  %v3273_v30 = vld [vmem:[#allocation2 + $0x184] ss:$12 sps:$4 sm:$0xff]   ;;  %v3735_v34 = vsub.s32 1, %v3649_v3 }
  0x3c   :  { %2771 = vmatmul.mubr.msk.bf16.vlgmr.msra.gmra.mrb[4].mxu1 %vm115_vm3, %v76_v27  ;;  %1260 = vmatprep.subr.bf16.mxu0 %v3215_v38  ;;  %v3732_v33 = vld [vmem:[%s3954_s4] sm:$0xff] }
  0x3d   :  { %227 = vmatpush1.bf16.msra.mxu1 %v133_v35  ;;  %258 = vmatprep.mubr.bf16.mxu1 %v3564_v4  ;;  %v538_v37 = vrot.slane %v3732_v33, %v3727_v32  ;;  %v542_v40 = vrot.slane %v3732_v33, %v3735_v34 }
  0x3e   :  { %2774 = vmatprep.subr.msk.bf16.mxu1 %vm119_vm1, %v114_v36 }
  0x3f   :  { %1261 = vmatpush1.bf16.msra.mxu0 %v3213_v41 }
  0x40   :  { %1262 = vmatprep.subr.bf16.mxu0 %v3218_v42 }
  0x43   :  { %1263 = vmatpush1.bf16.msra.mxu0 %v3216_v45 }
  0x44   :  { %2773 = vmatmul.mubr.msk.bf16.vlgmr.msra.gmra.mrb[8].mxu1 %vm115_vm3, %v76_v27  ;;  %1264 = vmatprep.subr.bf16.mxu0 %v3221_v46 }
  0x45   :  { %268 = vmatpush1.bf16.msra.mxu1 %v139_v43  ;;  %299 = vmatprep.mubr.bf16.mxu1 %v3564_v4 }
  0x46   :  { %2786 = vmatprep.subr.msk.bf16.mxu1 %vm344_vm0, %v2779_v44 }
  0x47   :  { %1265 = vmatpush1.bf16.msra.mxu0 %v3219_v50 }
  0x48   :  { %1266 = vmatprep.subr.bf16.mxu0 %v3224_v51 }
  0x4b   :  { %1267 = vmatpush1.bf16.msra.mxu0 %v3222_v52 }
  0x4c   :  { %2775 = vmatmul.mubr.msk.bf16.vlgmr.msra.gmra.mrb[12].mxu1 %vm115_vm3, %v76_v27  ;;  %1268 = vmatprep.subr.bf16.mxu0 %v3227_v55  ;;  %v3269_v27 = vld [vmem:[#allocation2 + $0x170] ss:$12 sps:$4 sm:$0xff]   ;;  %v3271_v55 = vld [vmem:[#allocation2 + $0x180] ss:$12 sps:$4 sm:$0xff]  }
  0x4d   :  { %411 = vmatpush1.bf16.msra.mxu1 %v352_v53  ;;  %442 = vmatprep.mubr.bf16.mxu1 %v3564_v4 }
  0x4e   :  { %2790 = vmatprep.subr.msk.bf16.mxu1 %vm344_vm0, %v2783_v54 }
  0x4f   :  { %1269 = vmatpush1.bf16.msra.mxu0 %v3225_v56  ;;  %v3275_v56 = vld [vmem:[#allocation2 + $0x188] ss:$12 sps:$4 sm:$0xff]  }
  0x50   :  { %1270 = vmatprep.subr.bf16.mxu0 %v3230_v58 }
  0x53   :  { %1271 = vmatpush1.bf16.msra.mxu0 %v3228_v60  ;;  %v3278_v60 = vld [vmem:[#allocation2 + $0x19c] ss:$12 sps:$4 sm:$0xff]  }
  0x54   :  { %2787 = vmatmul.mubr.msk.bf16.vlgmr.msra.gmra.mrb[16].mxu1 %vm340_vm2, %v3678_v22  ;;  %1272 = vmatprep.subr.bf16.mxu0 %v3233_v62 }
  0x55   :  { %493 = vmatpush1.bf16.msra.mxu1 %v364_v61  ;;  %524 = vmatprep.mubr.bf16.mxu1 %v3564_v4  ;;  %v3248_v4 = vld [vmem:[#allocation2 + $0x10c] ss:$12 sps:$4 sm:$0xff]  }
  0x56   :  { %3033 = vmatprep.subr.bf16.mxu1 %v3234_v59  ;;  %v3279_v61 = vld [vmem:[#allocation2 + $0x260] ss:$12 sps:$4 sm:$0xff]  }
  0x57   :  { %1273 = vmatpush1.bf16.msra.mxu0 %v3231_v63 }
  0x58   :  { %1274 = vmatprep.subr.bf16.mxu0 %v3238_v0 }
  0x5b   :  { %1275 = vmatpush1.bf16.msra.mxu0 %v3236_v5  ;;  %v3280_v5 = vld [vmem:[#allocation2 + $0x1a0] ss:$12 sps:$4 sm:$0xff]  }
  0x5c   :  { %2791 = vmatmul.mubr.msk.bf16.vlgmr.msra.gmra.mrb[20].mxu1 %vm340_vm2, %v3678_v22  ;;  %1276 = vmatprep.subr.bf16.mxu0 %v3243_v6  ;;  %v3263_v22 = vld [vmem:[#allocation2 + $0x154] ss:$12 sps:$4 sm:$0xff]  }
  0x5d   :  { %3034 = vmatpush3.bf16.msra.mxu1 %v3235_v1  ;;  %v553_v1 = vsub.s32 4, %v3649_v3  ;;  %v3283_v6 = vld [vmem:[#allocation2 + $0x1b4] ss:$12 sps:$4 sm:$0xff]  }
  0x5e   :  { %3035 = vmatprep.subr.bf16.mxu1 %v3239_v2  ;;  %v3276_v2 = vld [vmem:[#allocation2 + $0x198] ss:$12 sps:$4 sm:$0xff]  }
  0x5f   :  { %1277 = vmatpush1.bf16.msra.mxu0 %v3241_v9 }
  0x60   :  { %1278 = vmatprep.subr.bf16.mxu0 %v3248_v4  ;;  %v3281_v4 = vld [vmem:[#allocation2 + $0x1b0] ss:$12 sps:$4 sm:$0xff]  }
  0x61   :  { %3036 = vmatpush3.bf16.msra.mxu1 %v3240_v7  ;;  %v3284_v7 = vld [vmem:[#allocation2 + $0x278] ss:$12 sps:$4 sm:$0xff]  }
  0x62   :  { %3037 = vmatprep.subr.bf16.mxu1 %v3244_v8  ;;  %v554_v8 = vrot.slane %v3732_v33, %v553_v1 }
  0x63   :  { %1279 = vmatpush1.bf16.msra.mxu0 %v3246_v12 }
  0x64   :  { %1280 = vmatprep.subr.bf16.mxu0 %v3253_v13  ;;  %v3288_v13 = vld [vmem:[#allocation2 + $0x1cc] ss:$12 sps:$4 sm:$0xff]  }
  0x65   :  { %3038 = vmatpush3.bf16.msra.mxu1 %v3245_v10  ;;  %v3285_v10 = vld [vmem:[#allocation2 + $0x1b8] ss:$12 sps:$4 sm:$0xff]  }
  0x66   :  { %3039 = vmatprep.subr.bf16.mxu1 %v3249_v11 }
  0x67   :  { %1281 = vmatpush1.bf16.msra.mxu0 %v3251_v16 }
  0x68   :  { %1282 = vmatprep.subr.bf16.mxu0 %v3258_v18 }
  0x69   :  { %3040 = vmatpush3.bf16.msra.mxu1 %v3250_v14  ;;  %v3289_v14 = vld [vmem:[#allocation2 + $0x290] ss:$12 sps:$4 sm:$0xff]  }
  0x6a   :  { %3041 = vmatprep.subr.bf16.mxu1 %v3254_v15 }
  0x6b   :  { %1283 = vmatpush1.bf16.msra.mxu0 %v3256_v20  ;;  %v3290_v20 = vld [vmem:[#allocation2 + $0x1d0] ss:$12 sps:$4 sm:$0xff]  }
  0x6c   :  { %1284 = vmatprep.subr.bf16.mxu0 %v3263_v22  ;;  %v3294_v22 = vld [vmem:[#allocation2 + $0x2a8] ss:$12 sps:$4 sm:$0xff]  }
  0x6d   :  { %3042 = vmatpush3.bf16.msra.mxu1 %v3255_v17 }
  0x6e   :  { %3043 = vmatprep.subr.bf16.mxu1 %v3259_v19  ;;  %v3286_v19 = vld [vmem:[#allocation2 + $0x1c8] ss:$12 sps:$4 sm:$0xff]  }
  0x6f   :  { %1285 = vmatpush1.bf16.msra.mxu0 %v3261_v24  ;;  %v3291_v24 = vld [vmem:[#allocation2 + $0x1e0] ss:$12 sps:$4 sm:$0xff]  }
  0x70   :  { %1286 = vmatprep.subr.bf16.mxu0 %v3268_v26 }
  0x71   :  { %3044 = vmatpush3.bf16.msra.mxu1 %v3260_v21  ;;  %v3293_v21 = vld [vmem:[#allocation2 + $0x1e4] ss:$12 sps:$4 sm:$0xff]  }
  0x72   :  { %3045 = vmatprep.subr.bf16.mxu1 %v3264_v23 }
  0x73   :  { %1287 = vmatpush1.bf16.msra.mxu0 %v3266_v28  ;;  %v3299_v28 = vld [vmem:[#allocation2 + $0x2c0] ss:$12 sps:$4 sm:$0xff]  }
  0x74   :  { %1297 = vmatprep.subr.bf16.mxu0 %v3273_v30  ;;  %v557_v30 = vsub.s32 5, %v3649_v3 }
  0x75   :  { %3046 = vmatpush3.bf16.msra.mxu1 %v3265_v25  ;;  %v3295_v25 = vld [vmem:[#allocation2 + $0x1e8] ss:$12 sps:$4 sm:$0xff]  }
  0x76   :  { %3047 = vmatprep.subr.bf16.mxu1 %v3269_v27  ;;  %v3298_v27 = vld [vmem:[#allocation2 + $0x1fc] ss:$12 sps:$4 sm:$0xff]  }
  0x79   :  { %3048 = vmatpush3.bf16.msra.mxu1 %v3270_v29 }
  0x7a   :  { %3055 = vmatprep.subr.bf16.mxu1 %v3274_v31 }
 0x100   :  { %v403_v35 = vpop.f32.mrb[0].mxu0 }
 0x101   :  { %v405_v36 = vpop.f32.mrb[1].mxu0 }
 0x102   :  { %v407_v39 = vpop.f32.mrb[2].mxu0 }
 0x103   :  { %v408_v43 = vpop.f32.mrb[3].mxu0  ;;  %v3303_v39 = vld [vmem:[#allocation2 + $0x214] ss:$12 sps:$4 sm:$0xff]  }
 0x107   :  { %v178_v38 = vpop.f32.mrb[0].mxu1 }
 0x108   :  { %v404_v41 = vadd.f32 %v403_v35, %v178_v38  ;;  %v180_v42 = vpop.f32.mrb[1].mxu1  ;;  %v3755_v35 = vsub.s32 2, %v3649_v3  ;;  %v549_v38 = vsub.s32 3, %v3649_v3 }
 0x109   :  { %v406_v44 = vadd.f32 %v405_v36, %v180_v42  ;;  %v182_v45 = vpop.f32.mrb[2].mxu1  ;;  %v485_v51 = vpop.f32.mrb[4].mxu0  ;;  %v3296_v36 = vld [vmem:[#allocation2 + $0x1f8] ss:$12 sps:$4 sm:$0xff]  }
 0x10a   :  { %v575_v46 = vadd.f32 %v538_v37, %v404_v41  ;;  %v183_v47 = vpop.f32.mrb[3].mxu1  ;;  %v487_v52 = vpop.f32.mrb[5].mxu0  ;;  %v3300_v37 = vld [vmem:[#allocation2 + $0x200] ss:$12 sps:$4 sm:$0xff]   ;;  %v558_v41 = vrot.slane %v3732_v33, %v557_v30  ;;  %v546_v42 = vrot.slane %v3732_v33, %v3755_v35  ;;  %v3301_v45 = vld [vmem:[#allocation2 + $0x210] ss:$12 sps:$4 sm:$0xff]  }
 0x10b   :  { %v576_v48 = vadd.f32 %v542_v40, %v406_v44  ;;  %v489_v57 = vpop.f32.mrb[6].mxu0  ;;  %v3304_v40 = vld [vmem:[#allocation2 + $0x2d8] ss:$12 sps:$4 sm:$0xff]   ;;  %v550_v44 = vrot.slane %v3732_v33, %v549_v38  ;;  %v3346_v38 = vld [vmem:[#allocation4 + $0x7c] ss:$12 sps:$4 sm:$0xff]  }
 0x10c   :  { %v583_v49 = vmax.f32 %v575_v46, 0.0  ;;  %v490_v62 = vpop.f32.mrb[7].mxu0  ;;  %v3305_v46 = vld [vmem:[#allocation2 + $0x218] ss:$12 sps:$4 sm:$0xff]   ;;  %v561_v57 = vsub.s32 6, %v3649_v3 }
 0x10d   :  { %v584_v50 = vmax.f32 %v576_v48, 0.0  ;;  %v3340_v30 = vld [vmem:[#allocation4 + $0x64] ss:$12 sps:$4 sm:$0xff]  }
 0x10e   :  { %v591_v58 = vpack.c.bf16 %v583_v49, %v583_v49  ;;  %v3308_v49 = vld [vmem:[#allocation2 + $0x22c] ss:$12 sps:$4 sm:$0xff]  }
 0x10f   :  { %v592_v53 = vpack.c.bf16 %v584_v50, %v584_v50  ;;  %v3741_v54 = vpop.f32.mrb[4].mxu1  ;;  %v3309_v50 = vld [vmem:[#allocation2 + $0x2f0] ss:$12 sps:$4 sm:$0xff]  }
 0x110   :  { %v3743_v59 = vpop.f32.mrb[5].mxu1 }
 0x111   :  { %v223_v63 = vpop.f32.mrb[6].mxu1  ;;  %1288 = vmatprep.mubr.bf16.mxu0 %v592_v53  ;;  %1370 = vmatprep.mubr.bf16.mxu1 %v592_v53 }
 0x112   :  { %v224_v0 = vpop.f32.mrb[7].mxu1  ;;  %1289 = vmatmul.mubr.bf16.vlgmr.msra.gmra.mrb[8].mxu0 %v591_v58  ;;  %1371 = vmatmul.mubr.bf16.vlgmr.msra.gmra.mrb[24].mxu1 %v591_v58  ;;  %v3313_v63 = vld [vmem:[#allocation2 + $0x244] ss:$12 sps:$4 sm:$0xff]  }
 0x113   :  { %1298 = vmatpush1.bf16.msra.mxu0 %v3271_v55  ;;  %3056 = vmatpush3.bf16.msra.mxu1 %v3275_v56  ;;  %v3316_v0 = vld [vmem:[#allocation4 + $0x4] ss:$12 sps:$4 sm:$0xff]  }
 0x114   :  { %1299 = vmatprep.subr.bf16.mxu0 %v3278_v60  ;;  %3057 = vmatprep.subr.bf16.mxu1 %v3279_v61  ;;  %v3306_v60 = vld [vmem:[#allocation2 + $0x228] ss:$12 sps:$4 sm:$0xff]   ;;  %v3310_v61 = vld [vmem:[#allocation2 + $0x230] ss:$12 sps:$4 sm:$0xff]  }
 0x117   :  { %1300 = vmatpush1.bf16.msra.mxu0 %v3276_v2  ;;  %3058 = vmatpush3.bf16.msra.mxu1 %v3280_v5  ;;  %v260_v9 = vpop.f32.mrb[8].mxu1  ;;  %v562_v2 = vrot.slane %v3732_v33, %v561_v57  ;;  %v3368_v57 = vld [vmem:[#allocation4 + $0x20] ss:$12 sps:$4 sm:$0xff]  }
 0x118   :  { %v486_v11 = vadd.f32 %v485_v51, %v260_v9  ;;  %v262_v12 = vpop.f32.mrb[9].mxu1  ;;  %1301 = vmatprep.subr.bf16.mxu0 %v3283_v6  ;;  %3059 = vmatprep.subr.bf16.mxu1 %v3284_v7  ;;  %v3314_v9 = vld [vmem:[#allocation4] ss:$12 sps:$4 sm:$0xff]  }
 0x119   :  { %v488_v15 = vadd.f32 %v487_v52, %v262_v12  ;;  %v264_v16 = vpop.f32.mrb[10].mxu1 }
 0x11a   :  { %v3747_v17 = vadd.f32 %v554_v8, %v486_v11  ;;  %v265_v18 = vpop.f32.mrb[11].mxu1  ;;  %v3311_v8 = vld [vmem:[#allocation2 + $0x240] ss:$12 sps:$4 sm:$0xff]   ;;  %v3319_v11 = vld [vmem:[#allocation2 + $0x25c] ss:$12 sps:$4 sm:$0xff]  }
 0x11b   :  { %1302 = vmatpush1.bf16.msra.mxu0 %v3281_v4  ;;  %3060 = vmatpush3.bf16.msra.mxu1 %v3285_v10  ;;  %v580_v53 = vadd.f32 %v558_v41, %v488_v15  ;;  %v3349_v41 = vld [vmem:[#allocation2 + $0x2d4] ss:$12 sps:$4 sm:$0xff]  }
 0x11c   :  { %1303 = vmatprep.subr.bf16.mxu0 %v3288_v13  ;;  %3061 = vmatprep.subr.bf16.mxu1 %v3289_v14  ;;  %v3322_v13 = vld [vmem:[#allocation4 + $0x1c] ss:$12 sps:$4 sm:$0xff]  }
 0x11f   :  { %1304 = vmatpush1.bf16.msra.mxu0 %v3286_v19  ;;  %3062 = vmatpush3.bf16.msra.mxu1 %v3290_v20  ;;  %v3749_v23 = vpop.f32.mrb[12].mxu1  ;;  %v3317_v19 = vld [vmem:[#allocation2 + $0x258] ss:$12 sps:$4 sm:$0xff]  }
 0x120   :  { %v3751_v26 = vpop.f32.mrb[13].mxu1  ;;  %1305 = vmatprep.subr.bf16.mxu0 %v3293_v21  ;;  %3063 = vmatprep.subr.bf16.mxu1 %v3294_v22  ;;  %v3320_v20 = vld [vmem:[#allocation4 + $0x18] ss:$12 sps:$4 sm:$0xff]   ;;  %v3325_v21 = vld [vmem:[#allocation2 + $0x274] ss:$12 sps:$4 sm:$0xff]  }
 0x121   :  { %v305_v29 = vpop.f32.mrb[14].mxu1  ;;  %v3328_v22 = vld [vmem:[#allocation4 + $0x34] ss:$12 sps:$4 sm:$0xff]  }
 0x122   :  { %v306_v31 = vpop.f32.mrb[15].mxu1  ;;  %v3337_v29 = vld [vmem:[#allocation2 + $0x2a4] ss:$12 sps:$4 sm:$0xff]  }
 0x123   :  { %1306 = vmatpush1.bf16.msra.mxu0 %v3291_v24  ;;  %3064 = vmatpush3.bf16.msra.mxu1 %v3295_v25  ;;  %v3326_v24 = vld [vmem:[#allocation4 + $0x30] ss:$12 sps:$4 sm:$0xff]   ;;  %v3331_v25 = vld [vmem:[#allocation2 + $0x28c] ss:$12 sps:$4 sm:$0xff]  }
 0x124   :  { %1307 = vmatprep.subr.bf16.mxu0 %v3298_v27  ;;  %3065 = vmatprep.subr.bf16.mxu1 %v3299_v28  ;;  %v3329_v27 = vld [vmem:[#allocation2 + $0x288] ss:$12 sps:$4 sm:$0xff]   ;;  %v3335_v31 = vld [vmem:[#allocation2 + $0x2a0] ss:$12 sps:$4 sm:$0xff]  }
 0x125   :  { %v3332_v28 = vld [vmem:[#allocation4 + $0x48] ss:$12 sps:$4 sm:$0xff]  }
 0x127   :  { %1308 = vmatpush1.bf16.msra.mxu0 %v3296_v36  ;;  %3066 = vmatpush3.bf16.msra.mxu1 %v3300_v37  ;;  %v444_v43 = vpop.f32.mrb[16].mxu1  ;;  %v3338_v36 = vld [vmem:[#allocation4 + $0x60] ss:$12 sps:$4 sm:$0xff]   ;;  %v3343_v37 = vld [vmem:[#allocation2 + $0x2bc] ss:$12 sps:$4 sm:$0xff]  }
 0x128   :  { %v445_v47 = vadd.f32 %v444_v43, %v3741_v54  ;;  %v446_v48 = vpop.f32.mrb[17].mxu1  ;;  %1309 = vmatprep.subr.bf16.mxu0 %v3303_v39  ;;  %3067 = vmatprep.subr.bf16.mxu1 %v3304_v40  ;;  %v565_v54 = vsub.s32 7, %v3649_v3  ;;  %v3341_v39 = vld [vmem:[#allocation2 + $0x2b8] ss:$12 sps:$4 sm:$0xff]   ;;  %v3347_v43 = vld [vmem:[#allocation2 + $0x2d0] ss:$12 sps:$4 sm:$0xff]  }
 0x129   :  { %v447_v51 = vadd.f32 %v446_v48, %v3743_v59  ;;  %v448_v52 = vpop.f32.mrb[18].mxu1  ;;  %v588_v59 = vmax.f32 %v580_v53, 0.0  ;;  %v3344_v40 = vld [vmem:[#allocation4 + $0x78] ss:$12 sps:$4 sm:$0xff]   ;;  %v3356_v48 = vld [vmem:[#allocation4 + $0xa8] ss:$12 sps:$4 sm:$0xff]  }
 0x12a   :  { %v577_v55 = vadd.f32 %v546_v42, %v445_v47  ;;  %v449_v56 = vpop.f32.mrb[19].mxu1  ;;  %v566_v7 = vrot.slane %v3732_v33, %v565_v54  ;;  %v3352_v42 = vld [vmem:[#allocation4 + $0x94] ss:$12 sps:$4 sm:$0xff]   ;;  %v3366_v53 = vld [vmem:[#allocation4 + $0xdc] ss:$12 sps:$4 sm:$0xff]  }
 0x12b   :  { %v578_v58 = vadd.f32 %v550_v44, %v447_v51  ;;  %1310 = vmatpush1.bf16.msra.mxu0 %v3301_v45  ;;  %3068 = vmatpush3.bf16.msra.mxu1 %v3305_v46  ;;  %v3772_v15 = vpack.c.bf16 %v588_v59, %v588_v59  ;;  %v3350_v44 = vld [vmem:[#allocation4 + $0x90] ss:$12 sps:$4 sm:$0xff]   ;;  %v3355_v45 = vld [vmem:[#allocation2 + $0x2ec] ss:$12 sps:$4 sm:$0xff]   ;;  %v3353_v47 = vld [vmem:[#allocation2 + $0x2e8] ss:$12 sps:$4 sm:$0xff]  }
 0x12c   :  { %v585_v62 = vmax.f32 %v577_v55, 0.0  ;;  %1311 = vmatprep.subr.bf16.mxu0 %v3308_v49  ;;  %3069 = vmatprep.subr.bf16.mxu1 %v3309_v50  ;;  %v3358_v46 = vld [vmem:[#allocation4 + $0xac] ss:$12 sps:$4 sm:$0xff]   ;;  %v3361_v49 = vld [vmem:[#allocation4 + $0xc4] ss:$12 sps:$4 sm:$0xff]  }
 0x12d   :  { %v586_v1 = vmax.f32 %v578_v58, 0.0  ;;  %v3362_v50 = vld [vmem:[#allocation4 + $0xc8] ss:$12 sps:$4 sm:$0xff]   ;;  %v3359_v51 = vld [vmem:[#allocation4 + $0xc0] ss:$12 sps:$4 sm:$0xff]  }
 0x12e   :  { %v3768_v4 = vpack.c.bf16 %v585_v62, %v585_v62  ;;  %v3363_v52 = vld [vmem:[#allocation4 + $0x8] ss:$12 sps:$4 sm:$0xff]   ;;  %v3367_v55 = vld [vmem:[#allocation4 + $0xe0] ss:$12 sps:$4 sm:$0xff]   ;;  %v3364_v56 = vld [vmem:[#allocation4 + $0xd8] ss:$12 sps:$4 sm:$0xff]  }
 0x12f   :  { %v594_v5 = vpack.c.bf16 %v586_v1, %v586_v1  ;;  %1312 = vmatpush1.bf16.msra.mxu0 %v3306_v60  ;;  %3070 = vmatpush3.bf16.msra.mxu1 %v3310_v61  ;;  %v526_v6 = vpop.f32.mrb[20].mxu1  ;;  %v3371_v58 = vld [vmem:[#allocation4 + $0xf4] ss:$12 sps:$4 sm:$0xff]   ;;  %v3372_v60 = vld [vmem:[#allocation4 + $0xf8] ss:$12 sps:$4 sm:$0xff]  }
 0x130   :  { %v527_v3 = vadd.f32 %v526_v6, %v3749_v23  ;;  %v528_v10 = vpop.f32.mrb[21].mxu1  ;;  %1313 = vmatprep.subr.bf16.mxu0 %v3313_v63  ;;  %2078 = vmatprep.subr.bf16.mxu1 %v3316_v0  ;;  %v3323_v23 = vld [vmem:[#allocation2 + $0x270] ss:$12 sps:$4 sm:$0xff]   ;;  %v3373_v54 = vld [vmem:[#allocation4 + $0x38] ss:$12 sps:$4 sm:$0xff]  }
 0x131   :  { %v529_v12 = vadd.f32 %v528_v10, %v3751_v26  ;;  %1329 = vmatprep.mubr.bf16.mxu0 %v594_v5  ;;  %1410 = vmatprep.mubr.bf16.mxu1 %v594_v5  ;;  %v530_v14 = vpop.f32.mrb[22].mxu1  ;;  %v3334_v26 = vld [vmem:[#allocation4 + $0x4c] ss:$12 sps:$4 sm:$0xff]   ;;  %v3369_v61 = vld [vmem:[#allocation4 + $0xf0] ss:$12 sps:$4 sm:$0xff]  }
 0x132   :  { %v3774_v16 = vadd.f32 %v562_v2, %v527_v3  ;;  %1411 = vmatmul.mubr.bf16.vlgmr.msra.gmra.mrb[28].mxu1 %v3768_v4  ;;  %v531_v33 = vpop.f32.mrb[23].mxu1  ;;  %v3376_v62 = vld [vmem:[#allocation4 + $0x10c] ss:$12 sps:$4 sm:$0xff]   ;;  %v3377_v63 = vld [vmem:[#allocation4 + $0x110] ss:$12 sps:$4 sm:$0xff]  }
 0x133   :  { %v3777_v18 = vadd.f32 %v566_v7, %v529_v12  ;;  %1314 = vmatpush1.bf16.msra.mxu0 %v3311_v8  ;;  %2079 = vmatpush1.bf16.msra.mxu1 %v3314_v9  ;;  %v3374_v0 = vld [vmem:[#allocation4 + $0x108] ss:$12 sps:$4 sm:$0xff]   ;;  %v3378_v1 = vld [vmem:[#allocation4 + $0x50] ss:$12 sps:$4 sm:$0xff]   ;;  %v3379_v5 = vld [vmem:[#allocation4 + $0x120] ss:$12 sps:$4 sm:$0xff]  }
 0x134   :  { %2110 = vmatprep.mubr.bf16.mxu1 %v3772_v15  ;;  %1315 = vmatprep.subr.bf16.mxu0 %v3319_v11  ;;  %v3381_v59 = vld [vmem:[#allocation4 + $0x124] ss:$12 sps:$4 sm:$0xff]   ;;  %v3382_v2 = vld [vmem:[#allocation4 + $0x128] ss:$12 sps:$4 sm:$0xff]   ;;  %v3387_v8 = vld [vmem:[#allocation4 + $0x140] ss:$12 sps:$4 sm:$0xff]  }
 0x135   :  { %2080 = vmatprep.subr.bf16.mxu1 %v3322_v13  ;;  %v3383_v6 = vld [vmem:[#allocation4 + $0x68] ss:$12 sps:$4 sm:$0xff]   ;;  %v3384_v9 = vld [vmem:[#allocation4 + $0x138] ss:$12 sps:$4 sm:$0xff]   ;;  %v3389_v11 = vld [vmem:[#allocation4 + $0x150] ss:$12 sps:$4 sm:$0xff]  }
 0x136   :  { %v3386_v7 = vld [vmem:[#allocation4 + $0x13c] ss:$12 sps:$4 sm:$0xff]   ;;  %v3391_v3 = vld [vmem:[#allocation4 + $0x154] ss:$12 sps:$4 sm:$0xff]   ;;  %v3392_v10 = vld [vmem:[#allocation4 + $0x158] ss:$12 sps:$4 sm:$0xff]  }
 0x137   :  { %1316 = vmatpush1.bf16.msra.mxu0 %v3317_v19  ;;  %2081 = vmatpush1.bf16.msra.mxu1 %v3320_v20  ;;  %v3393_v12 = vld [vmem:[#allocation4 + $0x98] ss:$12 sps:$4 sm:$0xff]   ;;  %v3397_v14 = vld [vmem:[#allocation4 + $0x170] ss:$12 sps:$4 sm:$0xff]   ;;  %v587_v19 = vmax.f32 %v3747_v17, 0.0 }
 0x138   :  { %1317 = vmatprep.subr.bf16.mxu0 %v3325_v21  ;;  %2082 = vmatprep.subr.bf16.mxu1 %v3328_v22  ;;  %v3396_v13 = vld [vmem:[#allocation4 + $0x16c] ss:$12 sps:$4 sm:$0xff]   ;;  %v3398_v33 = vld [vmem:[#allocation4 + $0xb0] ss:$12 sps:$4 sm:$0xff]   ;;  %v3402_v21 = vld [vmem:[#allocation4 + $0x248] ss:$12 sps:$4 sm:$0xff]  }
 0x139   :  { %v3401_v20 = vld [vmem:[#allocation4 + $0x184] ss:$12 sps:$4 sm:$0xff]   ;;  %v590_v22 = vmax.f32 %v3777_v18, 0.0 }
 0x13a   :  { %v3404_v17 = vld [vmem:[#allocation4 + $0x198] ss:$12 sps:$4 sm:$0xff]  }
 0x13b   :  { %1318 = vmatpush1.bf16.msra.mxu0 %v3323_v23  ;;  %2083 = vmatpush1.bf16.msra.mxu1 %v3326_v24  ;;  %v3399_v23 = vld [vmem:[#allocation4 + $0x180] ss:$12 sps:$4 sm:$0xff]   ;;  %v595_v24 = vpack.c.bf16 %v587_v19, %v587_v19  ;;  %v3412_v18 = vld [vmem:[#allocation4 + $0x278] ss:$12 sps:$4 sm:$0xff]  }
 0x13c   :  { %1319 = vmatprep.subr.bf16.mxu0 %v3331_v25  ;;  %2084 = vmatprep.subr.bf16.mxu1 %v3334_v26  ;;  %v3403_v25 = vld [vmem:[#allocation4 + $0x188] ss:$12 sps:$4 sm:$0xff]   ;;  %v598_v26 = vpack.c.bf16 %v590_v22, %v590_v22  ;;  %v3457_v22 = vld [vmem:[#allocation4 + $0x2d0] ss:$12 sps:$4 sm:$0xff]  }
 0x13d   :  { %v3459_v19 = vld [vmem:[#allocation4 + $0x2d4] ss:$12 sps:$4 sm:$0xff]  }
 0x13f   :  { %1320 = vmatpush1.bf16.msra.mxu0 %v3329_v27  ;;  %2085 = vmatpush1.bf16.msra.mxu1 %v3332_v28  ;;  %v3406_v27 = vld [vmem:[#allocation4 + $0x19c] ss:$12 sps:$4 sm:$0xff]   ;;  %v3407_v28 = vld [vmem:[#allocation4 + $0x260] ss:$12 sps:$4 sm:$0xff]  }
 0x140   :  { %1321 = vmatprep.subr.bf16.mxu0 %v3337_v29  ;;  %2086 = vmatprep.subr.bf16.mxu1 %v3340_v30  ;;  %v3408_v29 = vld [vmem:[#allocation4 + $0x1a0] ss:$12 sps:$4 sm:$0xff]  }
 0x141   :  { %v3411_v30 = vld [vmem:[#allocation4 + $0x1b4] ss:$12 sps:$4 sm:$0xff]  }
 0x143   :  { %1322 = vmatpush1.bf16.msra.mxu0 %v3335_v31  ;;  %2087 = vmatpush1.bf16.msra.mxu1 %v3338_v36  ;;  %v3409_v31 = vld [vmem:[#allocation4 + $0x1b0] ss:$12 sps:$4 sm:$0xff]   ;;  %v3413_v36 = vld [vmem:[#allocation4 + $0x1b8] ss:$12 sps:$4 sm:$0xff]  }
 0x144   :  { %1323 = vmatprep.subr.bf16.mxu0 %v3343_v37  ;;  %2088 = vmatprep.subr.bf16.mxu1 %v3346_v38  ;;  %v3416_v37 = vld [vmem:[#allocation4 + $0x1cc] ss:$12 sps:$4 sm:$0xff]   ;;  %v3417_v38 = vld [vmem:[#allocation4 + $0x290] ss:$12 sps:$4 sm:$0xff]  }
 0x147   :  { %1324 = vmatpush1.bf16.msra.mxu0 %v3341_v39  ;;  %2089 = vmatpush1.bf16.msra.mxu1 %v3344_v40  ;;  %v3414_v39 = vld [vmem:[#allocation4 + $0x1c8] ss:$12 sps:$4 sm:$0xff]   ;;  %v3418_v40 = vld [vmem:[#allocation4 + $0x1d0] ss:$12 sps:$4 sm:$0xff]  }
 0x148   :  { %1325 = vmatprep.subr.bf16.mxu0 %v3349_v41  ;;  %2090 = vmatprep.subr.bf16.mxu1 %v3352_v42  ;;  %v3421_v41 = vld [vmem:[#allocation4 + $0x1e4] ss:$12 sps:$4 sm:$0xff]   ;;  %v3422_v42 = vld [vmem:[#allocation4 + $0x2a8] ss:$12 sps:$4 sm:$0xff]  }
 0x14b   :  { %1326 = vmatpush1.bf16.msra.mxu0 %v3347_v43  ;;  %2091 = vmatpush1.bf16.msra.mxu1 %v3350_v44  ;;  %v3419_v43 = vld [vmem:[#allocation4 + $0x1e0] ss:$12 sps:$4 sm:$0xff]   ;;  %v3423_v44 = vld [vmem:[#allocation4 + $0x1e8] ss:$12 sps:$4 sm:$0xff]  }
 0x14c   :  { %1327 = vmatprep.subr.bf16.mxu0 %v3355_v45  ;;  %2092 = vmatprep.subr.bf16.mxu1 %v3358_v46  ;;  %v3426_v45 = vld [vmem:[#allocation4 + $0x1fc] ss:$12 sps:$4 sm:$0xff]   ;;  %v3427_v46 = vld [vmem:[#allocation4 + $0x2c0] ss:$12 sps:$4 sm:$0xff]  }
 0x14f   :  { %1328 = vmatpush1.bf16.msra.mxu0 %v3353_v47  ;;  %2093 = vmatpush1.bf16.msra.mxu1 %v3356_v48  ;;  %v3424_v47 = vld [vmem:[#allocation4 + $0x1f8] ss:$12 sps:$4 sm:$0xff]   ;;  %v3428_v48 = vld [vmem:[#allocation4 + $0x200] ss:$12 sps:$4 sm:$0xff]  }
 0x150   :  { %2094 = vmatprep.subr.bf16.mxu1 %v3361_v49  ;;  %3077 = vmatprep.subr.bf16.mxu0 %v3362_v50  ;;  %v3431_v49 = vld [vmem:[#allocation4 + $0x214] ss:$12 sps:$4 sm:$0xff]   ;;  %v3432_v50 = vld [vmem:[#allocation4 + $0x2d8] ss:$12 sps:$4 sm:$0xff]  }
 0x152   :  { %1330 = vmatmul.mubr.bf16.vlgmr.msra.gmra.mrb[8].mxu0 %v3768_v4  ;;  %v3388_v4 = vld [vmem:[#allocation4 + $0x80] ss:$12 sps:$4 sm:$0xff]  }
 0x153   :  { %2095 = vmatpush1.bf16.msra.mxu1 %v3359_v51  ;;  %3078 = vmatpush3.bf16.msra.mxu0 %v3363_v52  ;;  %v3429_v51 = vld [vmem:[#allocation4 + $0x210] ss:$12 sps:$4 sm:$0xff]   ;;  %v3433_v52 = vld [vmem:[#allocation4 + $0x218] ss:$12 sps:$4 sm:$0xff]  }
 0x154   :  { %2192 = vmatprep.mubr.bf16.mxu0 %v3772_v15  ;;  %2096 = vmatprep.subr.bf16.mxu1 %v3366_v53  ;;  %v3394_v15 = vld [vmem:[#allocation4 + $0x168] ss:$12 sps:$4 sm:$0xff]   ;;  %v3436_v53 = vld [vmem:[#allocation4 + $0x22c] ss:$12 sps:$4 sm:$0xff]  }
 0x155   :  { %3079 = vmatprep.subr.bf16.mxu0 %v3367_v55  ;;  %v3437_v55 = vld [vmem:[#allocation4 + $0x2f0] ss:$12 sps:$4 sm:$0xff]  }
 0x157   :  { %2097 = vmatpush1.bf16.msra.mxu1 %v3364_v56  ;;  %3080 = vmatpush3.bf16.msra.mxu0 %v3368_v57  ;;  %v3434_v56 = vld [vmem:[#allocation4 + $0x228] ss:$12 sps:$4 sm:$0xff]   ;;  %v3438_v57 = vld [vmem:[#allocation4 + $0x230] ss:$12 sps:$4 sm:$0xff]  }
 0x158   :  { %2098 = vmatprep.subr.bf16.mxu1 %v3371_v58  ;;  %3081 = vmatprep.subr.bf16.mxu0 %v3372_v60  ;;  %v3441_v58 = vld [vmem:[#allocation4 + $0x244] ss:$12 sps:$4 sm:$0xff]   ;;  %v589_v60 = vmax.f32 %v3774_v16, 0.0  ;;  %v3465_v16 = vld [vmem:[%s3959_s9 + $0x48] sm:$0xff]  }
 0x15b   :  { %2099 = vmatpush1.bf16.msra.mxu1 %v3369_v61  ;;  %3082 = vmatpush3.bf16.msra.mxu0 %v3373_v54  ;;  %v3463_v61 = vld [vmem:[%s3959_s9 + $0x40] sm:$0xff]  }
 0x15c   :  { %2100 = vmatprep.subr.bf16.mxu1 %v3376_v62  ;;  %3083 = vmatprep.subr.bf16.mxu0 %v3377_v63  ;;  %v3439_v54 = vld [vmem:[#allocation4 + $0x240] ss:$12 sps:$4 sm:$0xff]   ;;  %v3444_v62 = vld [vmem:[#allocation4 + $0x25c] ss:$12 sps:$4 sm:$0xff]  }
 0x15d   :  { %v3464_v63 = vld [vmem:[%s3959_s9] sm:$0xff]  }
 0x15f   :  { %2101 = vmatpush1.bf16.msra.mxu1 %v3374_v0  ;;  %3084 = vmatpush3.bf16.msra.mxu0 %v3378_v1  ;;  %v597_v0 = vpack.c.bf16 %v589_v60, %v589_v60  ;;  %v3442_v1 = vld [vmem:[#allocation4 + $0x258] ss:$12 sps:$4 sm:$0xff]  }
 0x160   :  { %2102 = vmatprep.subr.bf16.mxu1 %v3381_v59  ;;  %3085 = vmatprep.subr.bf16.mxu0 %v3382_v2  ;;  %v3447_v59 = vld [vmem:[#allocation4 + $0x274] ss:$12 sps:$4 sm:$0xff]   ;;  %v3466_v2 = vld [vmem:[%s3959_s9 + $0x8] sm:$0xff]   ;;  %v3507_v60 = vld [vmem:[%s3959_s9 + $0xf8] sm:$0xff]  }
 0x163   :  { %2103 = vmatpush1.bf16.msra.mxu1 %v3379_v5  ;;  %3086 = vmatpush3.bf16.msra.mxu0 %v3383_v6  ;;  %v3467_v5 = vld [vmem:[%s3959_s9 + $0x50] sm:$0xff]  }
 0x164   :  { %2104 = vmatprep.subr.bf16.mxu1 %v3386_v7  ;;  %3087 = vmatprep.subr.bf16.mxu0 %v3387_v8  ;;  %v3445_v6 = vld [vmem:[#allocation4 + $0x270] ss:$12 sps:$4 sm:$0xff]   ;;  %v3450_v7 = vld [vmem:[#allocation4 + $0x28c] ss:$12 sps:$4 sm:$0xff]  }
 0x165   :  { %v3468_v8 = vld [vmem:[%s3959_s9 + $0x10] sm:$0xff]  }
 0x167   :  { %2105 = vmatpush1.bf16.msra.mxu1 %v3384_v9  ;;  %3088 = vmatpush3.bf16.msra.mxu0 %v3388_v4  ;;  %v3469_v9 = vld [vmem:[%s3959_s9 + $0x58] sm:$0xff]   ;;  %v3448_v4 = vld [vmem:[#allocation4 + $0x288] ss:$12 sps:$4 sm:$0xff]  }
 0x168   :  { %2106 = vmatprep.subr.bf16.mxu1 %v3391_v3  ;;  %3089 = vmatprep.subr.bf16.mxu0 %v3392_v10  ;;  %v3453_v3 = vld [vmem:[#allocation4 + $0x2a4] ss:$12 sps:$4 sm:$0xff]   ;;  %v3470_v10 = vld [vmem:[%s3959_s9 + $0x18] sm:$0xff]  }
 0x16b   :  { %2107 = vmatpush1.bf16.msra.mxu1 %v3389_v11  ;;  %3090 = vmatpush3.bf16.msra.mxu0 %v3393_v12  ;;  %v3471_v11 = vld [vmem:[%s3959_s9 + $0x60] sm:$0xff]  }
 0x16c   :  { %2108 = vmatprep.subr.bf16.mxu1 %v3396_v13  ;;  %3091 = vmatprep.subr.bf16.mxu0 %v3397_v14  ;;  %v3451_v12 = vld [vmem:[#allocation4 + $0x2a0] ss:$12 sps:$4 sm:$0xff]   ;;  %v3456_v13 = vld [vmem:[#allocation4 + $0x2bc] ss:$12 sps:$4 sm:$0xff]  }
 0x16d   :  { %v3472_v14 = vld [vmem:[%s3959_s9 + $0x20] sm:$0xff]  }
 0x16f   :  { %2109 = vmatpush1.bf16.msra.mxu1 %v3394_v15  ;;  %3092 = vmatpush3.bf16.msra.mxu0 %v3398_v33  ;;  %v3473_v15 = vld [vmem:[%s3959_s9 + $0x68] sm:$0xff]   ;;  %v3454_v33 = vld [vmem:[#allocation4 + $0x2b8] ss:$12 sps:$4 sm:$0xff]  }
 0x170   :  { %2119 = vmatprep.subr.bf16.mxu1 %v3401_v20  ;;  %3099 = vmatprep.subr.bf16.mxu0 %v3402_v21  ;;  %v3474_v20 = vld [vmem:[%s3959_s9 + $0x28] sm:$0xff]   ;;  %v3475_v21 = vld [vmem:[%s3959_s9 + $0x70] sm:$0xff]  }
 0x172   :  { %2111 = vmatmul.mubr.bf16.vlgmr.msra.gmra.mrb[32].mxu1 %v595_v24  ;;  %2193 = vmatmul.mubr.bf16.vlgmr.msra.gmra.mrb[12].mxu0 %v595_v24  ;;  %v3476_v24 = vld [vmem:[%s3959_s9 + $0x30] sm:$0xff]  }
 0x173   :  { %2120 = vmatpush1.bf16.msra.mxu1 %v3399_v23  ;;  %2151 = vmatprep.mubr.bf16.mxu1 %v598_v26  ;;  %v3462_v23 = vld [vmem:[#allocation4 + $0x2ec] ss:$12 sps:$4 sm:$0xff]  }
 0x174   :  { %3100 = vmatpush3.bf16.msra.mxu0 %v3403_v25  ;;  %2232 = vmatprep.mubr.bf16.mxu0 %v598_v26  ;;  %v3477_v25 = vld [vmem:[%s3959_s9 + $0x78] sm:$0xff]   ;;  %v3460_v26 = vld [vmem:[#allocation4 + $0x2e8] ss:$12 sps:$4 sm:$0xff]  }
 0x175   :  { %2121 = vmatprep.subr.bf16.mxu1 %v3406_v27  ;;  %3101 = vmatprep.subr.bf16.mxu0 %v3407_v28  ;;  %v3478_v27 = vld [vmem:[%s3959_s9 + $0x38] sm:$0xff]   ;;  %v727_v28 = vld [vmem:[%s3956_s6] sm:$0x7] }
 0x177   :  { %2122 = vmatpush1.bf16.msra.mxu1 %v3404_v17 }
 0x178   :  { %3102 = vmatpush3.bf16.msra.mxu0 %v3408_v29  ;;  %2123 = vmatprep.subr.bf16.mxu1 %v3411_v30  ;;  %v740_v29 = vrot.slane %v727_v28, %v3755_v35 }
 0x179   :  { %3103 = vmatprep.subr.bf16.mxu0 %v3412_v18 }
 0x17b   :  { %2124 = vmatpush1.bf16.msra.mxu1 %v3409_v31 }
 0x17c   :  { %3104 = vmatpush3.bf16.msra.mxu0 %v3413_v36  ;;  %2125 = vmatprep.subr.bf16.mxu1 %v3416_v37 }
 0x17d   :  { %3105 = vmatprep.subr.bf16.mxu0 %v3417_v38  ;;  %v3479_v38 = vld [vmem:[%s3959_s9 + $0xc0] sm:$0xff]  }
 0x17f   :  { %2126 = vmatpush1.bf16.msra.mxu1 %v3414_v39  ;;  %v3480_v39 = vld [vmem:[%s3959_s9 + $0x140] sm:$0xff]  }
 0x180   :  { %3106 = vmatpush3.bf16.msra.mxu0 %v3418_v40  ;;  %2127 = vmatprep.subr.bf16.mxu1 %v3421_v41  ;;  %v3481_v40 = vld [vmem:[%s3959_s9 + $0x80] sm:$0xff]   ;;  %v3483_v41 = vld [vmem:[%s3959_s9 + $0xc8] sm:$0xff]  }
 0x181   :  { %3107 = vmatprep.subr.bf16.mxu0 %v3422_v42  ;;  %v3485_v42 = vld [vmem:[%s3959_s9 + $0x88] sm:$0xff]  }
 0x183   :  { %2128 = vmatpush1.bf16.msra.mxu1 %v3419_v43  ;;  %v3487_v43 = vld [vmem:[%s3959_s9 + $0xd0] sm:$0xff]  }
 0x184   :  { %3108 = vmatpush3.bf16.msra.mxu0 %v3423_v44  ;;  %2129 = vmatprep.subr.bf16.mxu1 %v3426_v45  ;;  %v3489_v44 = vld [vmem:[%s3959_s9 + $0x90] sm:$0xff]   ;;  %v3491_v45 = vld [vmem:[%s3959_s9 + $0xd8] sm:$0xff]  }
 0x185   :  { %3109 = vmatprep.subr.bf16.mxu0 %v3427_v46  ;;  %v3493_v46 = vld [vmem:[%s3959_s9 + $0x98] sm:$0xff]  }
 0x187   :  { %2130 = vmatpush1.bf16.msra.mxu1 %v3424_v47  ;;  %v3495_v47 = vld [vmem:[%s3959_s9 + $0xe0] sm:$0xff]  }
 0x188   :  { %3110 = vmatpush3.bf16.msra.mxu0 %v3428_v48  ;;  %2131 = vmatprep.subr.bf16.mxu1 %v3431_v49  ;;  %v3497_v48 = vld [vmem:[%s3959_s9 + $0xa0] sm:$0xff]   ;;  %v3499_v49 = vld [vmem:[%s3959_s9 + $0xe8] sm:$0xff]  }
 0x189   :  { %3111 = vmatprep.subr.bf16.mxu0 %v3432_v50  ;;  %v3501_v50 = vld [vmem:[%s3959_s9 + $0xa8] sm:$0xff]  }
 0x18b   :  { %2132 = vmatpush1.bf16.msra.mxu1 %v3429_v51  ;;  %v3503_v51 = vld [vmem:[%s3959_s9 + $0xf0] sm:$0xff]  }
 0x18c   :  { %3112 = vmatpush3.bf16.msra.mxu0 %v3433_v52  ;;  %2133 = vmatprep.subr.bf16.mxu1 %v3436_v53  ;;  %v3505_v53 = vld [vmem:[%s3959_s9 + $0xb0] sm:$0xff]  }
 0x18d   :  { %3113 = vmatprep.subr.bf16.mxu0 %v3437_v55 }
 0x18f   :  { %2134 = vmatpush1.bf16.msra.mxu1 %v3434_v56 }
 0x190   :  { %3114 = vmatpush3.bf16.msra.mxu0 %v3438_v57  ;;  %2135 = vmatprep.subr.bf16.mxu1 %v3441_v58 }
 0x191   :  { %3121 = vmatprep.subr.bf16.mxu0 %v3463_v61 }
 0x193   :  { %2233 = vmatmul.mubr.bf16.vlgmr.msra.gmra.mrb[16].mxu0 %v597_v0  ;;  %2136 = vmatpush1.bf16.msra.mxu1 %v3439_v54  ;;  %v3509_v54 = vld [vmem:[%s3959_s9 + $0xb8] sm:$0xff]  }
 0x194   :  { %2137 = vmatprep.subr.bf16.mxu1 %v3444_v62  ;;  %3122 = vmatpush3.bf16.msra.mxu0 %v3464_v63  ;;  %v732_v62 = vrot.slane %v727_v28, %v3727_v32  ;;  %v736_v63 = vrot.slane %v727_v28, %v3735_v34  ;;  %v3510_v28 = vld [vmem:[%s3959_s9 + $0x138] sm:$0xff]  }
 0x195   :  { %3123 = vmatprep.subr.bf16.mxu0 %v3465_v16 }
 0x197   :  { %2138 = vmatpush1.bf16.msra.mxu1 %v3442_v1 }
 0x198   :  { %2139 = vmatprep.subr.bf16.mxu1 %v3447_v59  ;;  %3124 = vmatpush3.bf16.msra.mxu0 %v3466_v2 }
 0x199   :  { %3125 = vmatprep.subr.bf16.mxu0 %v3467_v5 }
 0x19b   :  { %2140 = vmatpush1.bf16.msra.mxu1 %v3445_v6 }
 0x19c   :  { %2141 = vmatprep.subr.bf16.mxu1 %v3450_v7  ;;  %3126 = vmatpush3.bf16.msra.mxu0 %v3468_v8 }
 0x19d   :  { %3127 = vmatprep.subr.bf16.mxu0 %v3469_v9  ;;  %v3482_v9 = vld [vmem:[%s3959_s9 + $0x100] sm:$0xff]  }
 0x19f   :  { %2142 = vmatpush1.bf16.msra.mxu1 %v3448_v4 }
 0x1a0   :  { %2143 = vmatprep.subr.bf16.mxu1 %v3453_v3  ;;  %3128 = vmatpush3.bf16.msra.mxu0 %v3470_v10  ;;  %v3484_v3 = vld [vmem:[%s3959_s9 + $0x148] sm:$0xff]  }
 0x1a1   :  { %3129 = vmatprep.subr.bf16.mxu0 %v3471_v11  ;;  %v3486_v10 = vld [vmem:[%s3959_s9 + $0x108] sm:$0xff]   ;;  %v3488_v11 = vld [vmem:[%s3959_s9 + $0x150] sm:$0xff]  }
 0x1a3   :  { %2144 = vmatpush1.bf16.msra.mxu1 %v3451_v12  ;;  %v3490_v12 = vld [vmem:[%s3959_s9 + $0x110] sm:$0xff]  }
 0x1a4   :  { %2145 = vmatprep.subr.bf16.mxu1 %v3456_v13  ;;  %3130 = vmatpush3.bf16.msra.mxu0 %v3472_v14  ;;  %v3492_v13 = vld [vmem:[%s3959_s9 + $0x158] sm:$0xff]  }
 0x1a5   :  { %3131 = vmatprep.subr.bf16.mxu0 %v3473_v15  ;;  %v3494_v14 = vld [vmem:[%s3959_s9 + $0x118] sm:$0xff]   ;;  %v3496_v15 = vld [vmem:[%s3959_s9 + $0x160] sm:$0xff]  }
 0x1a7   :  { %2146 = vmatpush1.bf16.msra.mxu1 %v3454_v33  ;;  %v3498_v33 = vld [vmem:[%s3959_s9 + $0x120] sm:$0xff]  }
 0x1a8   :  { %2147 = vmatprep.subr.bf16.mxu1 %v3459_v19  ;;  %3132 = vmatpush3.bf16.msra.mxu0 %v3474_v20  ;;  %v3500_v19 = vld [vmem:[%s3959_s9 + $0x168] sm:$0xff]  }
 0x1a9   :  { %3133 = vmatprep.subr.bf16.mxu0 %v3475_v21  ;;  %v3502_v20 = vld [vmem:[%s3959_s9 + $0x128] sm:$0xff]   ;;  %v3504_v21 = vld [vmem:[%s3959_s9 + $0x170] sm:$0xff]  }
 0x1ab   :  { %2148 = vmatpush1.bf16.msra.mxu1 %v3457_v22  ;;  %v3506_v22 = vld [vmem:[%s3959_s9 + $0x130] sm:$0xff]  }
 0x1ac   :  { %2149 = vmatprep.subr.bf16.mxu1 %v3462_v23  ;;  %3134 = vmatpush3.bf16.msra.mxu0 %v3476_v24  ;;  %v3508_v23 = vld [vmem:[%s3959_s9 + $0x178] sm:$0xff]  }
 0x1ad   :  { %3135 = vmatprep.subr.bf16.mxu0 %v3477_v25 }
 0x1af   :  { %2150 = vmatpush1.bf16.msra.mxu1 %v3460_v26 }
 0x1b0   :  { %3136 = vmatpush3.bf16.msra.mxu0 %v3478_v27  ;;  %3143 = vmatprep.subr.bf16.mxu1 %v3479_v38 }
 0x1b1   :  { %3165 = vmatprep.subr.bf16.mxu0 %v3480_v39 }
 0x1b2   :  { %2152 = vmatmul.mubr.bf16.vlgmr.msra.gmra.mrb[32].mxu1 %v597_v0 }
 0x1b3   :  { %3144 = vmatpush3.bf16.msra.mxu1 %v3481_v40 }
 0x1b4   :  { %3145 = vmatprep.subr.bf16.mxu1 %v3483_v41 }
 0x1b7   :  { %3146 = vmatpush3.bf16.msra.mxu1 %v3485_v42 }
 0x1b8   :  { %3147 = vmatprep.subr.bf16.mxu1 %v3487_v43 }
 0x1bb   :  { %3148 = vmatpush3.bf16.msra.mxu1 %v3489_v44 }
 0x1bc   :  { %3149 = vmatprep.subr.bf16.mxu1 %v3491_v45 }
 0x1bf   :  { %3150 = vmatpush3.bf16.msra.mxu1 %v3493_v46 }
 0x1c0   :  { %3151 = vmatprep.subr.bf16.mxu1 %v3495_v47 }
 0x1c3   :  { %3152 = vmatpush3.bf16.msra.mxu1 %v3497_v48 }
 0x1c4   :  { %3153 = vmatprep.subr.bf16.mxu1 %v3499_v49 }
 0x1c7   :  { %3154 = vmatpush3.bf16.msra.mxu1 %v3501_v50 }
 0x1c8   :  { %3155 = vmatprep.subr.bf16.mxu1 %v3503_v51 }
 0x1cb   :  { %3156 = vmatpush3.bf16.msra.mxu1 %v3505_v53 }
 0x1cc   :  { %3157 = vmatprep.subr.bf16.mxu1 %v3507_v60 }
 0x1cf   :  { %3158 = vmatpush3.bf16.msra.mxu1 %v3509_v54 }
 0x1e5   :  { %v3049_v17 = vpop.f32.mrb[24].mxu1 }
 0x1e6   :  { %v3050_v30 = vpop.f32.mrb[25].mxu1 }
 0x1e7   :  { %v3051_v18 = vadd.f32 %v3050_v30, %v3049_v17  ;;  %v3052_v31 = vpop.f32.mrb[26].mxu1 }
 0x1e8   :  { %v3053_v36 = vpop.f32.mrb[27].mxu1 }
 0x1e9   :  { %v1373_v37 = vadd.f32 %v3051_v18, %v740_v29  ;;  %v1549_v29 = vld [vmem:[%s3958_s8] sm:$0x7] }
 0x1ea   :  { %v1562_v30 = vrot.slane %v1549_v29, %v3755_v35  ;;  %v1554_v43 = vrot.slane %v1549_v29, %v3727_v32  ;;  %v1558_v44 = vrot.slane %v1549_v29, %v3735_v34 }
 0x205   :  { %v3071_v52 = vpop.f32.mrb[28].mxu1 }
 0x206   :  { %v3072_v55 = vpop.f32.mrb[29].mxu1 }
 0x207   :  { %v3073_v56 = vadd.f32 %v3072_v55, %v3071_v52  ;;  %v3074_v57 = vpop.f32.mrb[30].mxu1 }
 0x208   :  { %v3075_v58 = vpop.f32.mrb[31].mxu1 }
 0x209   :  { %v3885_v61 = vadd.f32 %v3073_v56, %v1373_v37 }
 0x20b   :  { %v1420_v48 = vmax.f32 %v3885_v61, 0.0  ;;  %v2984_v61 = vld [vmem:[%s3960_s10] ss:$0 sm:$0xff] }
 0x20d   :  { %v2245_v55 = vpack.c.bf16 %v1420_v48, %v1420_v48 }
 0x225   :  { %v1331_v0 = vpop.f32.mrb[8].mxu0 }
 0x226   :  { %v3187_v16 = vadd.f32 %v1331_v0, %v732_v62  ;;  %v1333_v1 = vpop.f32.mrb[9].mxu0 }
 0x227   :  { %v3188_v59 = vadd.f32 %v1333_v1, %v736_v63  ;;  %v1335_v2 = vpop.f32.mrb[10].mxu0 }
 0x228   :  { %v1418_v5 = vmax.f32 %v3187_v16, 0.0  ;;  %v1336_v6 = vpop.f32.mrb[11].mxu0 }
 0x229   :  { %v1419_v7 = vmax.f32 %v3188_v59, 0.0 }
 0x22a   :  { %v2243_v4 = vpack.c.bf16 %v1418_v5, %v1418_v5 }
 0x22b   :  { %v2244_v8 = vpack.c.bf16 %v1419_v7, %v1419_v7 }
 0x22d   :  { %2672 = vmatprep.mubr.bf16.mxu0 %v2244_v8 }
 0x22e   :  { %2673 = vmatmul.mubr.bf16.vlgmr.msra.gmra.mrb[20].mxu0 %v2243_v4 }
 0x22f   :  { %3166 = vmatpush3.bf16.msra.mxu0 %v3482_v9 }
 0x230   :  { %3167 = vmatprep.subr.bf16.mxu0 %v3484_v3 }
 0x233   :  { %3168 = vmatpush3.bf16.msra.mxu0 %v3486_v10 }
 0x234   :  { %3169 = vmatprep.subr.bf16.mxu0 %v3488_v11 }
 0x237   :  { %3170 = vmatpush3.bf16.msra.mxu0 %v3490_v12 }
 0x238   :  { %3171 = vmatprep.subr.bf16.mxu0 %v3492_v13 }
 0x23b   :  { %3172 = vmatpush3.bf16.msra.mxu0 %v3494_v14 }
 0x23c   :  { %3173 = vmatprep.subr.bf16.mxu0 %v3496_v15 }
 0x23f   :  { %3174 = vmatpush3.bf16.msra.mxu0 %v3498_v33 }
 0x240   :  { %3175 = vmatprep.subr.bf16.mxu0 %v3500_v19 }
 0x243   :  { %3176 = vmatpush3.bf16.msra.mxu0 %v3502_v20 }
 0x244   :  { %3177 = vmatprep.subr.bf16.mxu0 %v3504_v21 }
 0x245   :  { %v3093_v24 = vpop.f32.mrb[12].mxu0 }
 0x246   :  { %v3094_v25 = vpop.f32.mrb[13].mxu0 }
 0x247   :  { %v3095_v26 = vadd.f32 %v3094_v25, %v3093_v24  ;;  %v3096_v27 = vpop.f32.mrb[14].mxu0  ;;  %3178 = vmatpush3.bf16.msra.mxu0 %v3506_v22 }
 0x248   :  { %v3097_v17 = vpop.f32.mrb[15].mxu0  ;;  %3179 = vmatprep.subr.bf16.mxu0 %v3508_v23 }
 0x249   :  { %v2195_v36 = vadd.f32 %v3095_v26, %v1562_v30 }
 0x24b   :  { %3180 = vmatpush3.bf16.msra.mxu0 %v3510_v28 }
 0x266   :  { %v3115_v18 = vpop.f32.mrb[16].mxu0 }
 0x267   :  { %v3116_v31 = vpop.f32.mrb[17].mxu0 }
 0x268   :  { %v3117_v37 = vadd.f32 %v3116_v31, %v3115_v18  ;;  %v3118_v38 = vpop.f32.mrb[18].mxu0 }
 0x269   :  { %v3119_v39 = vpop.f32.mrb[19].mxu0 }
 0x26a   :  { %v2235_v40 = vadd.f32 %v3117_v37, %v2195_v36 }
 0x26c   :  { %v2242_v41 = vmax.f32 %v2235_v40, 0.0 }
 0x26e   :  { %v2248_v42 = vpack.c.bf16 %v2242_v41, %v2242_v41 }
 0x270   :  { %2752 = vmatprep.mubr.bf16.mxu0 %v2248_v42 }
 0x285   :  { %v2153_v45 = vpop.f32.mrb[32].mxu1 }
 0x286   :  { %v3189_v46 = vadd.f32 %v2153_v45, %v1554_v43  ;;  %v2155_v47 = vpop.f32.mrb[33].mxu1 }
 0x287   :  { %v3190_v35 = vadd.f32 %v2155_v47, %v1558_v44  ;;  %v2157_v49 = vpop.f32.mrb[34].mxu1 }
 0x288   :  { %v2240_v50 = vmax.f32 %v3189_v46, 0.0  ;;  %v2158_v51 = vpop.f32.mrb[35].mxu1 }
 0x289   :  { %v2241_v52 = vmax.f32 %v3190_v35, 0.0 }
 0x28a   :  { %v2246_v53 = vpack.c.bf16 %v2240_v50, %v2240_v50 }
 0x28b   :  { %v2247_v56 = vpack.c.bf16 %v2241_v52, %v2241_v52 }
 0x28c   :  { %2712 = vmatprep.mubr.bf16.mxu1 %v2246_v53 }
 0x28d   :  { %2713 = vmatmul.mubr.bf16.vlgmr.msra.gmra.mrb[36].mxu1 %v2245_v55  ;;  %2753 = vmatmul.mubr.bf16.vlgmr.msra.gmra.mrb[24].mxu0 %v2247_v56 }
 0x301   :  { %v3137_v57 = vpop.f32.mrb[20].mxu0 }
 0x302   :  { %v3138_v32 = vpop.f32.mrb[21].mxu0 }
 0x303   :  { %v3139_v58 = vadd.f32 %v3138_v32, %v3137_v57  ;;  %v3140_v34 = vpop.f32.mrb[22].mxu0 }
 0x304   :  { %v3141_v60 = vpop.f32.mrb[23].mxu0 }
 0x305   :  { %v2675_v16 = vadd.f32 %v3139_v58, %v2984_v61 }
 0x360   :  { %v3159_v54 = vpop.f32.mrb[36].mxu1  ;;  %v3181_v62 = vpop.f32.mrb[24].mxu0 }
 0x361   :  { %v3160_v63 = vpop.f32.mrb[37].mxu1  ;;  %v3182_v0 = vpop.f32.mrb[25].mxu0 }
 0x362   :  { %v3161_v1 = vadd.f32 %v3160_v63, %v3159_v54  ;;  %v3183_v59 = vadd.f32 %v3182_v0, %v3181_v62  ;;  %v3162_v2 = vpop.f32.mrb[38].mxu1  ;;  %v3184_v5 = vpop.f32.mrb[26].mxu0 }
 0x363   :  { %v3163_v6 = vpop.f32.mrb[39].mxu1  ;;  %v3185_v7 = vpop.f32.mrb[27].mxu0 }
 0x364   :  { %v2715_v8 = vadd.f32 %v3161_v1, %v2675_v16 }
 0x366   :  { %v2755_v9 = vadd.f32 %v3183_v59, %v2715_v8 }
 0x368   :  { %2761 = vst.msk [vmem:[%s3961_s11] sm:$0xff] %vm2760_vm4, %v2755_v9 }
 0x369   :  { %2766 = vsyncpa [#allocation3], 1 }
 0x36a   :  { %2767 = vsyncpa [#allocation5], 1 }

</bundles_post_ra>
